<compile_context>
chip_gen: v7x
topology: tpu7x:2x2x1
jax: 0.10.0
libtpu: 0.0.40
codegen_flags: <defaults>
</compile_context>

<pallas_src>
import math

import jax
import jax.numpy as jnp
from jax.experimental import pallas as pl
from jax.experimental.pallas import tpu as pltpu


def _make_kernel(n_heads, head_dim, has_mask, return_attention):
    def kernel(*refs):
        idx = 0
        mask_ref = None
        if has_mask:
            mask_ref = refs[0]
            idx = 1
        (q_ref, k_ref, v_ref,
         wq_ref, bq_ref, wk_ref, bk_ref, wv_ref, bv_ref,
         wo_ref, bo_ref) = refs[idx:idx + 11]
        idx += 11
        out_ref = refs[idx]
        idx += 1
        attn_ref = None
        if return_attention:
            attn_ref = refs[idx]
            idx += 1
        kproj_ref, vproj_ref = refs[idx], refs[idx + 1]

        f32 = jnp.float32
        bf16 = jnp.bfloat16

        # Project K / V once per batch element; the q-tile axis (inner, "arbitrary") is
        # iterated sequentially per core, so the scratch is valid for all later q-tiles.
        @pl.when(pl.program_id(1) == 0)
        def _():
            kproj_ref[...] = (jnp.dot(k_ref[0], wk_ref[...],
                                      preferred_element_type=f32)
                              + bk_ref[...]).astype(bf16)
            vproj_ref[...] = (jnp.dot(v_ref[0], wv_ref[...],
                                      preferred_element_type=f32)
                              + bv_ref[...]).astype(bf16)

        # Q projection for this q-tile (scale folded into wq / bq by the wrapper); cast to
        # bf16 once, heads are static lane slices of it.
        q_bf = (jnp.dot(q_ref[0], wq_ref[...], preferred_element_type=f32)
                + bq_ref[...]).astype(bf16)                              # (tq, D)

        if has_mask:
            masked = mask_ref[0] == 0                                    # (tq|1, S_k) bool

        # Contract the last dim of both operands: q @ k^T without any transpose op.
        qk_dims = (((1,), (1,)), ((), ()))

        # TODO(synk): for large n_heads, promote heads to a grid axis to bound live ranges;
        # static unroll keeps lane slices static which lowers cleanly for small H.
        ctx_parts = []
        for h in range(n_heads):
            lo = h * head_dim
            qh = q_bf[:, lo:lo + head_dim]                               # (tq,  hd) bf16
            kh = kproj_ref[:, lo:lo + head_dim]                          # (S_k, hd) bf16
            vh = vproj_ref[:, lo:lo + head_dim]                          # (S_k, hd) bf16

            e = jax.lax.dot_general(qh, kh, dimension_numbers=qk_dims,
                                    preferred_element_type=f32)          # (tq, S_k)
            if has_mask:
                # masked_fill(mask == 0, -10000.0) -- exact PyTorch semantics.
                e = jnp.where(masked, -10000.0, e)

            m = jnp.max(e, axis=-1, keepdims=True)
            p = jnp.exp(e - m)
            s = jnp.sum(p, axis=-1, keepdims=True)
            if return_attention:
                attn = p / s                    # exact: stored rows sum to 1
                attn_ref[0, h, :, :] = attn.astype(attn_ref.dtype)
            else:
                attn = p * pl.reciprocal(s, approx=True)   # EUP slot, not on the stored path
            # TODO(synk): nn.Dropout(p=0.1) on the probabilities is identity in eval mode.

            ctx_parts.append(jnp.dot(attn.astype(bf16), vh,
                                     preferred_element_type=f32))        # (tq, hd)

        # One K=D output projection instead of H per-head K=hd matmuls + add chain.
        ctx = jnp.concatenate(ctx_parts, axis=-1).astype(bf16)           # (tq, D)
        out = jnp.dot(ctx, wo_ref[...], preferred_element_type=f32) + bo_ref[...]
        out_ref[0] = out.astype(out_ref.dtype)

    return kernel


def _block_bytes(shape, dtype):
    return math.prod(shape) * jnp.dtype(dtype).itemsize


def multi_head_attention(query, key, value, params, mask=None, *, n_heads,
                         return_attention=True, attn_dtype=jnp.float32):
    """Forward pass of MultiHeadAttentionLayer.

    Returns (out, attention) like the PyTorch module; attention is omitted when
    return_attention=False (it is the largest HBM write at realistic sequence lengths;
    pass attn_dtype=jnp.bfloat16 to halve its traffic when it is needed).
    """
    B, S_q, D = query.shape
    S_k = key.shape[1]
    assert D % n_heads == 0, "d_model must be divisible by n_heads"
    head_dim = D // n_heads
    inv_scale = 1.0 / math.sqrt(head_dim)

    wq, bq, wk, bk, wv, bv, wo, bo = params
    bf16 = jnp.bfloat16
    f32 = jnp.float32

    # Fold the attention scale into the Q projection (free) and feed the MXU bf16 operands.
    wq_b = (wq * inv_scale).astype(bf16)
    bq_s = (bq * inv_scale).astype(f32)
    wk_b = wk.astype(bf16)
    wv_b = wv.astype(bf16)
    wo_b = wo.astype(bf16)

    q_b = query.astype(bf16)
    k_b = key.astype(bf16)
    v_b = value.astype(bf16)

    # q-tile size: biggest of 512/256/128 that divides S_q, else the full S_q.
    # TODO(synk): add a flash-style S_k tile axis (online softmax) for very long S_k.
    tq = S_q
    for cand in (512, 256, 128):
        if S_q > cand and S_q % cand == 0:
            tq = cand
            break
    n_q_tiles = S_q // tq

    has_mask = mask is not None
    kernel = _make_kernel(n_heads, head_dim, has_mask, return_attention)

    inputs = []
    in_specs = []
    mask_q_blk = 1
    if has_mask:
        m = jnp.asarray(mask)
        if m.ndim == 2:
            m = m[None]
        assert m.ndim == 3, "mask must be broadcastable to (B, S_q, S_k)"
        mB, mQ, _ = m.shape
        mask_i8 = (m != 0).astype(jnp.int8)          # no full (B,S_q,S_k) expansion
        mask_q_blk = tq if mQ != 1 else 1

        def mask_imap(b, i, _mB=mB, _mQ=mQ):
            return (b if _mB != 1 else 0, i if _mQ != 1 else 0, 0)

        inputs.append(mask_i8)
        in_specs.append(pl.BlockSpec((1, mask_q_blk, S_k), mask_imap))

    inputs += [q_b, k_b, v_b,
               wq_b, bq_s, wk_b, bk.astype(f32), wv_b, bv.astype(f32),
               wo_b, bo.astype(f32)]
    w_spec = pl.BlockSpec((D, D), lambda b, i: (0, 0))
    b_spec = pl.BlockSpec((1, D), lambda b, i: (0, 0))
    in_specs += [pl.BlockSpec((1, tq, D), lambda b, i: (b, i, 0)),
                 pl.BlockSpec((1, S_k, D), lambda b, i: (b, 0, 0)),
                 pl.BlockSpec((1, S_k, D), lambda b, i: (b, 0, 0)),
                 w_spec, b_spec, w_spec, b_spec, w_spec, b_spec,
                 w_spec, b_spec]

    out_shapes = [jax.ShapeDtypeStruct((B, S_q, D), query.dtype)]
    out_specs = [pl.BlockSpec((1, tq, D), lambda b, i: (b, i, 0))]
    if return_attention:
        out_shapes.append(jax.ShapeDtypeStruct((B, n_heads, S_q, S_k), attn_dtype))
        out_specs.append(pl.BlockSpec((1, n_heads, tq, S_k), lambda b, i: (b, 0, i, 0)))

    scratch_shapes = [pltpu.VMEM((S_k, D), bf16),    # projected K (persists across q-tiles)
                      pltpu.VMEM((S_k, D), bf16)]    # projected V

    # Size the scoped VMEM limit to the working set (default 16/32 MiB is easy to exceed).
    est = 0
    est += 2 * _block_bytes((1, tq, D), bf16)                       # q block
    est += 2 * 2 * _block_bytes((1, S_k, D), bf16)                  # k, v blocks
    est += 2 * 4 * _block_bytes((D, D), bf16)                       # 4 weight matrices
    est += 2 * 4 * _block_bytes((1, D), f32)                        # 4 biases
    est += 2 * _block_bytes((1, tq, D), query.dtype)                # output block
    if return_attention:
        est += 2 * _block_bytes((1, n_heads, tq, S_k), attn_dtype)  # attention block
    if has_mask:
        est += 2 * _block_bytes((1, mask_q_blk, S_k), jnp.int8)
    est += 2 * _block_bytes((S_k, D), bf16)                         # scratch (single-buffered)
    vmem_limit = int(min(128 * 1024 * 1024, max(2 * est, 32 * 1024 * 1024)))

    results = pl.pallas_call(
        kernel,
        out_shape=tuple(out_shapes),
        grid=(B, n_q_tiles),
        in_specs=in_specs,
        out_specs=tuple(out_specs),
        scratch_shapes=scratch_shapes,
        compiler_params=pltpu.CompilerParams(
            dimension_semantics=("parallel", "arbitrary"),
            vmem_limit_bytes=vmem_limit),
    )(*inputs)

    if return_attention:
        out, attn = results
        return out, attn
    return results[0]


def reference_mha(query, key, value, params, n_heads, mask=None):
    """Plain-JAX f32 reference replicating the PyTorch forward (dropout = identity)."""
    wq, bq, wk, bk, wv, bv, wo, bo = params
    B, S_q, D = query.shape
    S_k = key.shape[1]
    hd = D // n_heads
    Q = query @ wq + bq
    K = key @ wk + bk
    V = value @ wv + bv
    Qh = Q.reshape(B, S_q, n_heads, hd).transpose(0, 2, 1, 3)
    Kh = K.reshape(B, S_k, n_heads, hd).transpose(0, 2, 1, 3)
    Vh = V.reshape(B, S_k, n_heads, hd).transpose(0, 2, 1, 3)
    energy = jnp.einsum('bhqd,bhkd->bhqk', Qh, Kh) / math.sqrt(hd)
    if mask is not None:
        m = jnp.broadcast_to(mask, (B, S_q, S_k))[:, None, :, :]
        energy = jnp.where(m == 0, -10000.0, energy)
    attn = jax.nn.softmax(energy, axis=-1)
    x = jnp.einsum('bhqk,bhkd->bhqd', attn, Vh)
    x = x.transpose(0, 2, 1, 3).reshape(B, S_q, D)
    return x @ wo + bo, attn


if __name__ == "__main__":
    B, S, D, H = 2, 8, 32, 4

    root = jax.random.PRNGKey(0)
    ks = jax.random.split(root, 12)

    # Deterministic params mimicking nn.Linear default init: U(-1/sqrt(d), 1/sqrt(d))
    bound = 1.0 / math.sqrt(D)

    def u(k, shape):
        return jax.random.uniform(k, shape, jnp.float32, -bound, bound)

    wq, bq = u(ks[0], (D, D)), u(ks[1], (1, D))
    wk, bk = u(ks[2], (D, D)), u(ks[3], (1, D))
    wv, bv = u(ks[4], (D, D)), u(ks[5], (1, D))
    wo, bo = u(ks[6], (D, D)), u(ks[7], (1, D))
    params = (wq, bq, wk, bk, wv, bv, wo, bo)

    query = jax.random.normal(ks[8], (B, S, D), jnp.float32)
    key_t = jax.random.normal(ks[9], (B, S, D), jnp.float32)
    value = jax.random.normal(ks[10], (B, S, D), jnp.float32)

    # 1) mask=None path (specialized kernel: no mask HBM traffic, no where()).
    out, attn = multi_head_attention(query, key_t, value, params, mask=None, n_heads=H)
    jax.block_until_ready((out, attn))
    out_r, attn_r = reference_mha(query, key_t, value, params, H, mask=None)
    assert out.shape == (B, S, D) and attn.shape == (B, H, S, S)
    assert jnp.allclose(out, out_r, atol=5e-2, rtol=5e-2), "output mismatch (no mask)"
    assert jnp.allclose(attn, attn_r, atol=2e-2, rtol=5e-2), "attention mismatch (no mask)"

    # 2) masked path (causal mask passed as int8 into the kernel).
    causal = jnp.tril(jnp.ones((S, S), jnp.float32))
    mask = jnp.broadcast_to(causal[None], (B, S, S))
    out_m, attn_m = multi_head_attention(query, key_t, value, params, mask=mask, n_heads=H)
    jax.block_until_ready((out_m, attn_m))
    out_mr, attn_mr = reference_mha(query, key_t, value, params, H, mask=mask)
    assert jnp.allclose(out_m, out_mr, atol=5e-2, rtol=5e-2), "output mismatch (masked)"
    assert jnp.allclose(attn_m, attn_mr, atol=2e-2, rtol=5e-2), "attention mismatch (masked)"

    # 3) unexpanded (B, 1, S_k) padding mask (no S_q x broadcast in HBM).
    pad = jnp.concatenate([jnp.ones((B, 1, S - 2), jnp.float32),
                           jnp.zeros((B, 1, 2), jnp.float32)], axis=-1)
    out_p, attn_p = multi_head_attention(query, key_t, value, params, mask=pad, n_heads=H)
    jax.block_until_ready((out_p, attn_p))
    out_pr, attn_pr = reference_mha(query, key_t, value, params, H, mask=pad)
    assert jnp.allclose(out_p, out_pr, atol=5e-2, rtol=5e-2), "output mismatch (padding mask)"
    assert jnp.allclose(attn_p, attn_pr, atol=2e-2, rtol=5e-2), "attention mismatch (padding)"

    # 4) return_attention=False path (approx-reciprocal softmax normalization).
    out_n = multi_head_attention(query, key_t, value, params, mask=mask, n_heads=H,
                                 return_attention=False)
    jax.block_until_ready(out_n)
    assert jnp.allclose(out_n, out_mr, atol=5e-2, rtol=5e-2), "output mismatch (no-attn path)"

    print("KERNEL_OK")
</pallas_src>

<mosaic_0001>
module attributes {stable_mosaic.version = 11 : i64} {
  func.func @kernel(%arg0: i32, %arg1: i32, %arg2: memref<1x8x32xbf16, #tpu.memory_space<vmem>>, %arg3: memref<1x8x32xbf16, #tpu.memory_space<vmem>>, %arg4: memref<1x8x32xbf16, #tpu.memory_space<vmem>>, %arg5: memref<32x32xbf16, #tpu.memory_space<vmem>>, %arg6: memref<1x32xf32, #tpu.memory_space<vmem>>, %arg7: memref<32x32xbf16, #tpu.memory_space<vmem>>, %arg8: memref<1x32xf32, #tpu.memory_space<vmem>>, %arg9: memref<32x32xbf16, #tpu.memory_space<vmem>>, %arg10: memref<1x32xf32, #tpu.memory_space<vmem>>, %arg11: memref<32x32xbf16, #tpu.memory_space<vmem>>, %arg12: memref<1x32xf32, #tpu.memory_space<vmem>>, %arg13: memref<1x8x32xf32, #tpu.memory_space<vmem>>, %arg14: memref<1x4x8x8xf32, #tpu.memory_space<vmem>>, %arg15: memref<8x32xbf16, #tpu.memory_space<vmem>>, %arg16: memref<8x32xbf16, #tpu.memory_space<vmem>>) attributes {dimension_semantics = [#tpu.dimension_semantics<parallel>, #tpu.dimension_semantics<arbitrary>], iteration_bounds = array<i64: 2, 1>, scalar_prefetch = 0 : i64, scratch_operands = 2 : i64, tpu.core_type = #tpu.core_type<tc>, window_params = [{transform_indices = @transform_0, window_bounds = array<i64: 1, 8, 32>}, {transform_indices = @transform_1, window_bounds = array<i64: 1, 8, 32>}, {transform_indices = @transform_2, window_bounds = array<i64: 1, 8, 32>}, {pipeline_mode = #tpu.pipeline_mode<synchronous>, transform_indices = @transform_3, window_bounds = array<i64: 32, 32>}, {pipeline_mode = #tpu.pipeline_mode<synchronous>, transform_indices = @transform_4, window_bounds = array<i64: 1, 32>}, {pipeline_mode = #tpu.pipeline_mode<synchronous>, transform_indices = @transform_5, window_bounds = array<i64: 32, 32>}, {pipeline_mode = #tpu.pipeline_mode<synchronous>, transform_indices = @transform_6, window_bounds = array<i64: 1, 32>}, {pipeline_mode = #tpu.pipeline_mode<synchronous>, transform_indices = @transform_7, window_bounds = array<i64: 32, 32>}, {pipeline_mode = #tpu.pipeline_mode<synchronous>, transform_indices = @transform_8, window_bounds = array<i64: 1, 32>}, {pipeline_mode = #tpu.pipeline_mode<synchronous>, transform_indices = @transform_9, window_bounds = array<i64: 32, 32>}, {pipeline_mode = #tpu.pipeline_mode<synchronous>, transform_indices = @transform_10, window_bounds = array<i64: 1, 32>}, {transform_indices = @transform_11, window_bounds = array<i64: 1, 8, 32>}, {transform_indices = @transform_12, window_bounds = array<i64: 1, 4, 8, 8>}]} {
    %c0_i32 = arith.constant 0 : i32
    %0 = arith.cmpi eq, %arg1, %c0_i32 : i32
    %1 = arith.extui %0 : i1 to i32
    %c0_i32_0 = arith.constant 0 : i32
    %2 = arith.cmpi ne, %1, %c0_i32_0 : i32
    scf.if %2 {
      %c0_57 = arith.constant 0 : index
      %c0_58 = arith.constant 0 : index
      %c0_59 = arith.constant 0 : index
      %93 = vector.load %arg3[%c0_57, %c0_58, %c0_59] : memref<1x8x32xbf16, #tpu.memory_space<vmem>>, vector<1x8x32xbf16>
      %94 = vector.shape_cast %93 : vector<1x8x32xbf16> to vector<8x32xbf16>
      %c0_60 = arith.constant 0 : index
      %c0_61 = arith.constant 0 : index
      %95 = vector.load %arg7[%c0_60, %c0_61] : memref<32x32xbf16, #tpu.memory_space<vmem>>, vector<32x32xbf16>
      %cst_62 = arith.constant dense<0.000000e+00> : vector<8x32xf32>
      %96 = tpu.matmul %94, %95, %cst_62 {dimension_numbers = #tpu.dot_dimension_numbers<[1], [0], [0], [1], [0, 0, 1, 1], [], []>} : vector<8x32xbf16>, vector<32x32xbf16>, vector<8x32xf32> -> vector<8x32xf32>
      %c0_63 = arith.constant 0 : index
      %c0_64 = arith.constant 0 : index
      %97 = vector.load %arg8[%c0_63, %c0_64] : memref<1x32xf32, #tpu.memory_space<vmem>>, vector<1x32xf32>
      %98 = vector.broadcast %97 : vector<1x32xf32> to vector<8x32xf32>
      %99 = arith.addf %96, %98 : vector<8x32xf32>
      %100 = arith.truncf %99 : vector<8x32xf32> to vector<8x32xbf16>
      %c0_65 = arith.constant 0 : index
      %c0_66 = arith.constant 0 : index
      %101 = vector.load %arg15[%c0_65, %c0_66] : memref<8x32xbf16, #tpu.memory_space<vmem>>, vector<8x32xbf16>
      tpu.vector_store %arg15[%c0_65, %c0_66], %100 {strides = array<i32>} : memref<8x32xbf16, #tpu.memory_space<vmem>>, vector<8x32xbf16>,
      %c0_67 = arith.constant 0 : index
      %c0_68 = arith.constant 0 : index
      %c0_69 = arith.constant 0 : index
      %102 = vector.load %arg4[%c0_67, %c0_68, %c0_69] : memref<1x8x32xbf16, #tpu.memory_space<vmem>>, vector<1x8x32xbf16>
      %103 = vector.shape_cast %102 : vector<1x8x32xbf16> to vector<8x32xbf16>
      %c0_70 = arith.constant 0 : index
      %c0_71 = arith.constant 0 : index
      %104 = vector.load %arg9[%c0_70, %c0_71] : memref<32x32xbf16, #tpu.memory_space<vmem>>, vector<32x32xbf16>
      %cst_72 = arith.constant dense<0.000000e+00> : vector<8x32xf32>
      %105 = tpu.matmul %103, %104, %cst_72 {dimension_numbers = #tpu.dot_dimension_numbers<[1], [0], [0], [1], [0, 0, 1, 1], [], []>} : vector<8x32xbf16>, vector<32x32xbf16>, vector<8x32xf32> -> vector<8x32xf32>
      %c0_73 = arith.constant 0 : index
      %c0_74 = arith.constant 0 : index
      %106 = vector.load %arg10[%c0_73, %c0_74] : memref<1x32xf32, #tpu.memory_space<vmem>>, vector<1x32xf32>
      %107 = vector.broadcast %106 : vector<1x32xf32> to vector<8x32xf32>
      %108 = arith.addf %105, %107 : vector<8x32xf32>
      %109 = arith.truncf %108 : vector<8x32xf32> to vector<8x32xbf16>
      %c0_75 = arith.constant 0 : index
      %c0_76 = arith.constant 0 : index
      %110 = vector.load %arg16[%c0_75, %c0_76] : memref<8x32xbf16, #tpu.memory_space<vmem>>, vector<8x32xbf16>
      tpu.vector_store %arg16[%c0_75, %c0_76], %109 {strides = array<i32>} : memref<8x32xbf16, #tpu.memory_space<vmem>>, vector<8x32xbf16>,
    } else {
    }
    %c0 = arith.constant 0 : index
    %c0_1 = arith.constant 0 : index
    %c0_2 = arith.constant 0 : index
    %3 = vector.load %arg2[%c0, %c0_1, %c0_2] : memref<1x8x32xbf16, #tpu.memory_space<vmem>>, vector<1x8x32xbf16>
    %4 = vector.shape_cast %3 : vector<1x8x32xbf16> to vector<8x32xbf16>
    %c0_3 = arith.constant 0 : index
    %c0_4 = arith.constant 0 : index
    %5 = vector.load %arg5[%c0_3, %c0_4] : memref<32x32xbf16, #tpu.memory_space<vmem>>, vector<32x32xbf16>
    %cst = arith.constant dense<0.000000e+00> : vector<8x32xf32>
    %6 = tpu.matmul %4, %5, %cst {dimension_numbers = #tpu.dot_dimension_numbers<[1], [0], [0], [1], [0, 0, 1, 1], [], []>} : vector<8x32xbf16>, vector<32x32xbf16>, vector<8x32xf32> -> vector<8x32xf32>
    %c0_5 = arith.constant 0 : index
    %c0_6 = arith.constant 0 : index
    %7 = vector.load %arg6[%c0_5, %c0_6] : memref<1x32xf32, #tpu.memory_space<vmem>>, vector<1x32xf32>
    %8 = vector.broadcast %7 : vector<1x32xf32> to vector<8x32xf32>
    %9 = arith.addf %6, %8 : vector<8x32xf32>
    %10 = arith.truncf %9 : vector<8x32xf32> to vector<8x32xbf16>
    %11 = vector.extract_strided_slice %10 {offsets = [0, 0], sizes = [8, 8], strides = [1, 1]} : vector<8x32xbf16> to vector<8x8xbf16>
    %c0_7 = arith.constant 0 : index
    %c0_8 = arith.constant 0 : index
    %12 = vector.load %arg15[%c0_7, %c0_8] : memref<8x32xbf16, #tpu.memory_space<vmem>>, vector<8x8xbf16>
    %c0_9 = arith.constant 0 : index
    %c0_10 = arith.constant 0 : index
    %13 = vector.load %arg16[%c0_9, %c0_10] : memref<8x32xbf16, #tpu.memory_space<vmem>>, vector<8x8xbf16>
    %cst_11 = arith.constant dense<0.000000e+00> : vector<8x8xf32>
    %14 = tpu.matmul %11, %12, %cst_11 {dimension_numbers = #tpu.dot_dimension_numbers<[1], [1], [0], [0], [0, 0, 1, 0], [], []>} : vector<8x8xbf16>, vector<8x8xbf16>, vector<8x8xf32> -> vector<8x8xf32>
    %cst_12 = arith.constant dense<0xFF800000> : vector<8xf32>
    %15 = vector.multi_reduction <maximumf>, %14, %cst_12 [1] : vector<8x8xf32> to vector<8xf32>
    %16 = vector.shape_cast %15 : vector<8xf32> to vector<8x1xf32>
    %17 = vector.broadcast %16 : vector<8x1xf32> to vector<8x8xf32>
    %18 = arith.subf %14, %17 : vector<8x8xf32>
    %19 = math.exp %18 : vector<8x8xf32>
    %cst_13 = arith.constant dense<0.000000e+00> : vector<8xf32>
    %20 = vector.multi_reduction <add>, %19, %cst_13 [1] : vector<8x8xf32> to vector<8xf32>
    %21 = vector.shape_cast %20 : vector<8xf32> to vector<8x1xf32>
    %22 = vector.broadcast %21 : vector<8x1xf32> to vector<8x8xf32>
    %23 = arith.divf %19, %22 : vector<8x8xf32>
    %c0_14 = arith.constant 0 : index
    %c0_15 = arith.constant 0 : index
    %c0_16 = arith.constant 0 : index
    %c0_17 = arith.constant 0 : index
    %24 = vector.load %arg14[%c0_14, %c0_15, %c0_16, %c0_17] : memref<1x4x8x8xf32, #tpu.memory_space<vmem>>, vector<1x1x8x8xf32>
    %25 = vector.shape_cast %24 : vector<1x1x8x8xf32> to vector<8x8xf32>
    %26 = vector.shape_cast %23 : vector<8x8xf32> to vector<1x1x8x8xf32>
    tpu.vector_store %arg14[%c0_14, %c0_15, %c0_16, %c0_17], %26 {strides = array<i32>} : memref<1x4x8x8xf32, #tpu.memory_space<vmem>>, vector<1x1x8x8xf32>,
    %27 = arith.truncf %23 : vector<8x8xf32> to vector<8x8xbf16>
    %cst_18 = arith.constant dense<0.000000e+00> : vector<8x8xf32>
    %28 = tpu.matmul %27, %13, %cst_18 {dimension_numbers = #tpu.dot_dimension_numbers<[1], [0], [0], [1], [0, 0, 1, 1], [], []>} : vector<8x8xbf16>, vector<8x8xbf16>, vector<8x8xf32> -> vector<8x8xf32>
    %29 = vector.extract_strided_slice %10 {offsets = [0, 8], sizes = [8, 8], strides = [1, 1]} : vector<8x32xbf16> to vector<8x8xbf16>
    %c0_19 = arith.constant 0 : index
    %c8 = arith.constant 8 : index
    %30 = vector.load %arg15[%c0_19, %c8] : memref<8x32xbf16, #tpu.memory_space<vmem>>, vector<8x8xbf16>
    %c0_20 = arith.constant 0 : index
    %c8_21 = arith.constant 8 : index
    %31 = vector.load %arg16[%c0_20, %c8_21] : memref<8x32xbf16, #tpu.memory_space<vmem>>, vector<8x8xbf16>
    %cst_22 = arith.constant dense<0.000000e+00> : vector<8x8xf32>
    %32 = tpu.matmul %29, %30, %cst_22 {dimension_numbers = #tpu.dot_dimension_numbers<[1], [1], [0], [0], [0, 0, 1, 0], [], []>} : vector<8x8xbf16>, vector<8x8xbf16>, vector<8x8xf32> -> vector<8x8xf32>
    %cst_23 = arith.constant dense<0xFF800000> : vector<8xf32>
    %33 = vector.multi_reduction <maximumf>, %32, %cst_23 [1] : vector<8x8xf32> to vector<8xf32>
    %34 = vector.shape_cast %33 : vector<8xf32> to vector<8x1xf32>
    %35 = vector.broadcast %34 : vector<8x1xf32> to vector<8x8xf32>
    %36 = arith.subf %32, %35 : vector<8x8xf32>
    %37 = math.exp %36 : vector<8x8xf32>
    %cst_24 = arith.constant dense<0.000000e+00> : vector<8xf32>
    %38 = vector.multi_reduction <add>, %37, %cst_24 [1] : vector<8x8xf32> to vector<8xf32>
    %39 = vector.shape_cast %38 : vector<8xf32> to vector<8x1xf32>
    %40 = vector.broadcast %39 : vector<8x1xf32> to vector<8x8xf32>
    %41 = arith.divf %37, %40 : vector<8x8xf32>
    %c0_25 = arith.constant 0 : index
    %c1 = arith.constant 1 : index
    %c0_26 = arith.constant 0 : index
    %c0_27 = arith.constant 0 : index
    %42 = vector.load %arg14[%c0_25, %c1, %c0_26, %c0_27] : memref<1x4x8x8xf32, #tpu.memory_space<vmem>>, vector<1x1x8x8xf32>
    %43 = vector.shape_cast %42 : vector<1x1x8x8xf32> to vector<8x8xf32>
    %44 = vector.shape_cast %41 : vector<8x8xf32> to vector<1x1x8x8xf32>
    tpu.vector_store %arg14[%c0_25, %c1, %c0_26, %c0_27], %44 {strides = array<i32>} : memref<1x4x8x8xf32, #tpu.memory_space<vmem>>, vector<1x1x8x8xf32>,
    %45 = arith.truncf %41 : vector<8x8xf32> to vector<8x8xbf16>
    %cst_28 = arith.constant dense<0.000000e+00> : vector<8x8xf32>
    %46 = tpu.matmul %45, %31, %cst_28 {dimension_numbers = #tpu.dot_dimension_numbers<[1], [0], [0], [1], [0, 0, 1, 1], [], []>} : vector<8x8xbf16>, vector<8x8xbf16>, vector<8x8xf32> -> vector<8x8xf32>
    %47 = vector.extract_strided_slice %10 {offsets = [0, 16], sizes = [8, 8], strides = [1, 1]} : vector<8x32xbf16> to vector<8x8xbf16>
    %c0_29 = arith.constant 0 : index
    %c16 = arith.constant 16 : index
    %48 = vector.load %arg15[%c0_29, %c16] : memref<8x32xbf16, #tpu.memory_space<vmem>>, vector<8x8xbf16>
    %c0_30 = arith.constant 0 : index
    %c16_31 = arith.constant 16 : index
    %49 = vector.load %arg16[%c0_30, %c16_31] : memref<8x32xbf16, #tpu.memory_space<vmem>>, vector<8x8xbf16>
    %cst_32 = arith.constant dense<0.000000e+00> : vector<8x8xf32>
    %50 = tpu.matmul %47, %48, %cst_32 {dimension_numbers = #tpu.dot_dimension_numbers<[1], [1], [0], [0], [0, 0, 1, 0], [], []>} : vector<8x8xbf16>, vector<8x8xbf16>, vector<8x8xf32> -> vector<8x8xf32>
    %cst_33 = arith.constant dense<0xFF800000> : vector<8xf32>
    %51 = vector.multi_reduction <maximumf>, %50, %cst_33 [1] : vector<8x8xf32> to vector<8xf32>
    %52 = vector.shape_cast %51 : vector<8xf32> to vector<8x1xf32>
    %53 = vector.broadcast %52 : vector<8x1xf32> to vector<8x8xf32>
    %54 = arith.subf %50, %53 : vector<8x8xf32>
    %55 = math.exp %54 : vector<8x8xf32>
    %cst_34 = arith.constant dense<0.000000e+00> : vector<8xf32>
    %56 = vector.multi_reduction <add>, %55, %cst_34 [1] : vector<8x8xf32> to vector<8xf32>
    %57 = vector.shape_cast %56 : vector<8xf32> to vector<8x1xf32>
    %58 = vector.broadcast %57 : vector<8x1xf32> to vector<8x8xf32>
    %59 = arith.divf %55, %58 : vector<8x8xf32>
    %c0_35 = arith.constant 0 : index
    %c2 = arith.constant 2 : index
    %c0_36 = arith.constant 0 : index
    %c0_37 = arith.constant 0 : index
    %60 = vector.load %arg14[%c0_35, %c2, %c0_36, %c0_37] : memref<1x4x8x8xf32, #tpu.memory_space<vmem>>, vector<1x1x8x8xf32>
    %61 = vector.shape_cast %60 : vector<1x1x8x8xf32> to vector<8x8xf32>
    %62 = vector.shape_cast %59 : vector<8x8xf32> to vector<1x1x8x8xf32>
    tpu.vector_store %arg14[%c0_35, %c2, %c0_36, %c0_37], %62 {strides = array<i32>} : memref<1x4x8x8xf32, #tpu.memory_space<vmem>>, vector<1x1x8x8xf32>,
    %63 = arith.truncf %59 : vector<8x8xf32> to vector<8x8xbf16>
    %cst_38 = arith.constant dense<0.000000e+00> : vector<8x8xf32>
    %64 = tpu.matmul %63, %49, %cst_38 {dimension_numbers = #tpu.dot_dimension_numbers<[1], [0], [0], [1], [0, 0, 1, 1], [], []>} : vector<8x8xbf16>, vector<8x8xbf16>, vector<8x8xf32> -> vector<8x8xf32>
    %65 = vector.extract_strided_slice %10 {offsets = [0, 24], sizes = [8, 8], strides = [1, 1]} : vector<8x32xbf16> to vector<8x8xbf16>
    %c0_39 = arith.constant 0 : index
    %c24 = arith.constant 24 : index
    %66 = vector.load %arg15[%c0_39, %c24] : memref<8x32xbf16, #tpu.memory_space<vmem>>, vector<8x8xbf16>
    %c0_40 = arith.constant 0 : index
    %c24_41 = arith.constant 24 : index
    %67 = vector.load %arg16[%c0_40, %c24_41] : memref<8x32xbf16, #tpu.memory_space<vmem>>, vector<8x8xbf16>
    %cst_42 = arith.constant dense<0.000000e+00> : vector<8x8xf32>
    %68 = tpu.matmul %65, %66, %cst_42 {dimension_numbers = #tpu.dot_dimension_numbers<[1], [1], [0], [0], [0, 0, 1, 0], [], []>} : vector<8x8xbf16>, vector<8x8xbf16>, vector<8x8xf32> -> vector<8x8xf32>
    %cst_43 = arith.constant dense<0xFF800000> : vector<8xf32>
    %69 = vector.multi_reduction <maximumf>, %68, %cst_43 [1] : vector<8x8xf32> to vector<8xf32>
    %70 = vector.shape_cast %69 : vector<8xf32> to vector<8x1xf32>
    %71 = vector.broadcast %70 : vector<8x1xf32> to vector<8x8xf32>
    %72 = arith.subf %68, %71 : vector<8x8xf32>
    %73 = math.exp %72 : vector<8x8xf32>
    %cst_44 = arith.constant dense<0.000000e+00> : vector<8xf32>
    %74 = vector.multi_reduction <add>, %73, %cst_44 [1] : vector<8x8xf32> to vector<8xf32>
    %75 = vector.shape_cast %74 : vector<8xf32> to vector<8x1xf32>
    %76 = vector.broadcast %75 : vector<8x1xf32> to vector<8x8xf32>
    %77 = arith.divf %73, %76 : vector<8x8xf32>
    %c0_45 = arith.constant 0 : index
    %c3 = arith.constant 3 : index
    %c0_46 = arith.constant 0 : index
    %c0_47 = arith.constant 0 : index
    %78 = vector.load %arg14[%c0_45, %c3, %c0_46, %c0_47] : memref<1x4x8x8xf32, #tpu.memory_space<vmem>>, vector<1x1x8x8xf32>
    %79 = vector.shape_cast %78 : vector<1x1x8x8xf32> to vector<8x8xf32>
    %80 = vector.shape_cast %77 : vector<8x8xf32> to vector<1x1x8x8xf32>
    tpu.vector_store %arg14[%c0_45, %c3, %c0_46, %c0_47], %80 {strides = array<i32>} : memref<1x4x8x8xf32, #tpu.memory_space<vmem>>, vector<1x1x8x8xf32>,
    %81 = arith.truncf %77 : vector<8x8xf32> to vector<8x8xbf16>
    %cst_48 = arith.constant dense<0.000000e+00> : vector<8x8xf32>
    %82 = tpu.matmul %81, %67, %cst_48 {dimension_numbers = #tpu.dot_dimension_numbers<[1], [0], [0], [1], [0, 0, 1, 1], [], []>} : vector<8x8xbf16>, vector<8x8xbf16>, vector<8x8xf32> -> vector<8x8xf32>
    %83 = tpu.concatenate %28, %46, %64, %82 in 1 : vector<8x8xf32>, vector<8x8xf32>, vector<8x8xf32>, vector<8x8xf32> -> vector<8x32xf32>
    %84 = arith.truncf %83 : vector<8x32xf32> to vector<8x32xbf16>
    %c0_49 = arith.constant 0 : index
    %c0_50 = arith.constant 0 : index
    %85 = vector.load %arg11[%c0_49, %c0_50] : memref<32x32xbf16, #tpu.memory_space<vmem>>, vector<32x32xbf16>
    %cst_51 = arith.constant dense<0.000000e+00> : vector<8x32xf32>
    %86 = tpu.matmul %84, %85, %cst_51 {dimension_numbers = #tpu.dot_dimension_numbers<[1], [0], [0], [1], [0, 0, 1, 1], [], []>} : vector<8x32xbf16>, vector<32x32xbf16>, vector<8x32xf32> -> vector<8x32xf32>
    %c0_52 = arith.constant 0 : index
    %c0_53 = arith.constant 0 : index
    %87 = vector.load %arg12[%c0_52, %c0_53] : memref<1x32xf32, #tpu.memory_space<vmem>>, vector<1x32xf32>
    %88 = vector.broadcast %87 : vector<1x32xf32> to vector<8x32xf32>
    %89 = arith.addf %86, %88 : vector<8x32xf32>
    %c0_54 = arith.constant 0 : index
    %c0_55 = arith.constant 0 : index
    %c0_56 = arith.constant 0 : index
    %90 = vector.load %arg13[%c0_54, %c0_55, %c0_56] : memref<1x8x32xf32, #tpu.memory_space<vmem>>, vector<1x8x32xf32>
    %91 = vector.shape_cast %90 : vector<1x8x32xf32> to vector<8x32xf32>
    %92 = vector.shape_cast %89 : vector<8x32xf32> to vector<1x8x32xf32>
    tpu.vector_store %arg13[%c0_54, %c0_55, %c0_56], %92 {strides = array<i32>} : memref<1x8x32xf32, #tpu.memory_space<vmem>>, vector<1x8x32xf32>,
    return
  }
  func.func @transform_0(%arg0: i32, %arg1: i32) -> (i32, i32, i32) {
    %c0_i32 = arith.constant 0 : i32
    %c0_i32_0 = arith.constant 0 : i32
    return %arg0, %arg1, %c0_i32 : i32, i32, i32
  }
  func.func @transform_1(%arg0: i32, %arg1: i32) -> (i32, i32, i32) {
    %c0_i32 = arith.constant 0 : i32
    %c0_i32_0 = arith.constant 0 : i32
    %c0_i32_1 = arith.constant 0 : i32
    return %arg0, %c0_i32, %c0_i32_0 : i32, i32, i32
  }
  func.func @transform_2(%arg0: i32, %arg1: i32) -> (i32, i32, i32) {
    %c0_i32 = arith.constant 0 : i32
    %c0_i32_0 = arith.constant 0 : i32
    %c0_i32_1 = arith.constant 0 : i32
    return %arg0, %c0_i32, %c0_i32_0 : i32, i32, i32
  }
  func.func @transform_3(%arg0: i32, %arg1: i32) -> (i32, i32) {
    %c0_i32 = arith.constant 0 : i32
    %c0_i32_0 = arith.constant 0 : i32
    %c0_i32_1 = arith.constant 0 : i32
    return %c0_i32, %c0_i32_0 : i32, i32
  }
  func.func @transform_4(%arg0: i32, %arg1: i32) -> (i32, i32) {
    %c0_i32 = arith.constant 0 : i32
    %c0_i32_0 = arith.constant 0 : i32
    %c0_i32_1 = arith.constant 0 : i32
    return %c0_i32, %c0_i32_0 : i32, i32
  }
  func.func @transform_5(%arg0: i32, %arg1: i32) -> (i32, i32) {
    %c0_i32 = arith.constant 0 : i32
    %c0_i32_0 = arith.constant 0 : i32
    %c0_i32_1 = arith.constant 0 : i32
    return %c0_i32, %c0_i32_0 : i32, i32
  }
  func.func @transform_6(%arg0: i32, %arg1: i32) -> (i32, i32) {
    %c0_i32 = arith.constant 0 : i32
    %c0_i32_0 = arith.constant 0 : i32
    %c0_i32_1 = arith.constant 0 : i32
    return %c0_i32, %c0_i32_0 : i32, i32
  }
  func.func @transform_7(%arg0: i32, %arg1: i32) -> (i32, i32) {
    %c0_i32 = arith.constant 0 : i32
    %c0_i32_0 = arith.constant 0 : i32
    %c0_i32_1 = arith.constant 0 : i32
    return %c0_i32, %c0_i32_0 : i32, i32
  }
  func.func @transform_8(%arg0: i32, %arg1: i32) -> (i32, i32) {
    %c0_i32 = arith.constant 0 : i32
    %c0_i32_0 = arith.constant 0 : i32
    %c0_i32_1 = arith.constant 0 : i32
    return %c0_i32, %c0_i32_0 : i32, i32
  }
  func.func @transform_9(%arg0: i32, %arg1: i32) -> (i32, i32) {
    %c0_i32 = arith.constant 0 : i32
    %c0_i32_0 = arith.constant 0 : i32
    %c0_i32_1 = arith.constant 0 : i32
    return %c0_i32, %c0_i32_0 : i32, i32
  }
  func.func @transform_10(%arg0: i32, %arg1: i32) -> (i32, i32) {
    %c0_i32 = arith.constant 0 : i32
    %c0_i32_0 = arith.constant 0 : i32
    %c0_i32_1 = arith.constant 0 : i32
    return %c0_i32, %c0_i32_0 : i32, i32
  }
  func.func @transform_11(%arg0: i32, %arg1: i32) -> (i32, i32, i32) {
    %c0_i32 = arith.constant 0 : i32
    %c0_i32_0 = arith.constant 0 : i32
    return %arg0, %arg1, %c0_i32 : i32, i32, i32
  }
  func.func @transform_12(%arg0: i32, %arg1: i32) -> (i32, i32, i32, i32) {
    %c0_i32 = arith.constant 0 : i32
    %c0_i32_0 = arith.constant 0 : i32
    %c0_i32_1 = arith.constant 0 : i32
    return %arg0, %c0_i32, %arg1, %c0_i32_0 : i32, i32, i32, i32
  }
}

</mosaic_0001>

<bundles_post_ra>
// kernel: tpu_custom_call.1
= control target key start
LH: loop header
LB: loop body
LE: loop exit
PB: predicated region body
PF: predicated region fallthrough
CT: control target
= control target key end

     0   :  { %s2759_s0 = inlined_call_operand.hbm [shape: bf16[2,8,32], index: 0, kind: input, shape index: {}]   ;;  %s2760_s1 = inlined_call_operand.hbm [shape: bf16[2,8,32], index: 1, kind: input, shape index: {}]   ;;  %s2761_s2 = inlined_call_operand.hbm [shape: bf16[2,8,32], index: 2, kind: input, shape index: {}]   ;;  %s2762_s3 = inlined_call_operand.hbm [shape: bf16[32,32], index: 3, kind: input, shape index: {}]   ;;  %s2763_s4 = inlined_call_operand.vmem [shape: f32[1,32], index: 4, kind: input, shape index: {}]   ;;  %s2764_s5 = inlined_call_operand.vmem [shape: bf16[32,32], index: 5, kind: input, shape index: {}]   ;;  %s2765_s6 = inlined_call_operand.vmem [shape: f32[1,32], index: 6, kind: input, shape index: {}]   ;;  %s2766_s7 = inlined_call_operand.hbm [shape: bf16[32,32], index: 7, kind: input, shape index: {}]   ;;  %s2767_s8 = inlined_call_operand.hbm [shape: f32[1,32], index: 8, kind: input, shape index: {}]   ;;  %s2768_s9 = inlined_call_operand.vmem [shape: bf16[32,32], index: 9, kind: input, shape index: {}]   ;;  %s2769_s10 = inlined_call_operand.vmem [shape: f32[1,32], index: 10, kind: input, shape index: {}]   ;;  %s2770_s11 = inlined_call_operand.hbm [shape: f32[2,8,32], index: 11, kind: output, shape index: {0}]   ;;  %s2771_s12 = inlined_call_operand.hbm [shape: f32[2,4,8,8], index: 12, kind: output, shape index: {1}]  }
   0x1   :  { %2799 = sst [smem:[#allocation32_spill]] %s2760_s1 }
   0x2   :  { %2800 = sst [smem:[#allocation33_spill]] %s2762_s3 }
   0x3   :  { %2801 = sst [smem:[#allocation34_spill]] %s2763_s4 }
   0x4   :  { %2802 = sst [smem:[#allocation35_spill]] %s2765_s6 }
   0x5   :  { %2803 = sst [smem:[#allocation36_spill]] %s2768_s9 }
   0x6   :  { %2804 = sst [smem:[#allocation37_spill]] %s2769_s10 }
   0x7   :  { %2805 = sst [smem:[#allocation38_spill]] %s2770_s11 }
   0x8   :  { %2806 = sst [smem:[#allocation39_spill]] %s2771_s12 }
   0x9   :  { %18 = vsyncpa [#allocation5], 0 }
   0xa   :  { %20 = vsyncpa [#allocation5 + $0x1], 0 }
   0xb   :  { %21 = vsyncpa [#allocation8], 0 }
   0xc   :  { %23 = vsyncpa [#allocation8 + $0x1], 0 }
   0xd   :  { %24 = vsyncpa [#allocation11], 0 }
   0xe   :  { %25 = vsyncpa [#allocation14], 0 }
   0xf   :  { %26 = vsyncpa [#allocation6], 0 }
  0x10   :  { %28 = vsyncpa [#allocation6 + $0x1], 0 }
  0x11   :  { %29 = vsyncpa [#allocation17], 0 }
  0x12   :  { %31 = vsyncpa [#allocation17 + $0x1], 0  ;;  %s2270_s21 = smov 0   ;;  %s2272_s22 = smov 0  }
  0x13   :  { %s2274_s23 = smov 0   ;;  %s2276_s24 = smov 0  }
  0x14   :  { %s2278_s25 = smov 0   ;;  %s2280_s26 = smov 0  }
  0x15 LB: > { %2807 = sst [smem:[#allocation24_spill]] %s2164_s21  ;;  %s2301_s27 = sadd.s32 4294967295, %s2184_s26   ;;  %s2184_s26 = sphi %s2280_s26, %s37_s26   ;;  %s2180_s25 = sphi %s2278_s25, %s2857_s25   ;;  %s2176_s24 = sphi %s2276_s24, %s2856_s24   ;;  %s2172_s23 = sphi %s2274_s23, %s2860_s23   ;;  %s2168_s22 = sphi %s2272_s22, %s2859_s22   ;;  %s2164_s21 = sphi %s2270_s21, %s2858_s21  }
  0x16   : > { %2808 = sst [smem:[#allocation25_spill]] %s2176_s24  ;;  %s1565_s28 = sadd.s32 4294967294, %s2184_s26  }
  0x17   : > { %2809 = sst [smem:[#allocation26_spill]] %s2180_s25  ;;  %p71_p0 = scmp.ne.s32.totalorder %s2168_s22, %s2164_s21 }
  0x18   : > { %2810 = sst [smem:[#allocation27_spill]] %s2184_s26  ;;  %p2775_p1 = scmp.eq.s32.totalorder %s2301_s27, 0 }
  0x19   : > { %p323_p3 = scmp.eq.s32.totalorder %s1565_s28, 1  ;;  %p1566_p5 = scmp.ge.s32.totalorder %s2184_s26, 1 }
  0x1a   : > { %p2310_p4 = por %p2775_p1, %p71_p0  ;;  %p358_p7 = scmp.lt.s32.totalorder %s2184_s26, 3 }
  0x1b   : > { %p2315_p6 = por %p323_p3, %p71_p0  ;;  %s2186_s14 = smov [#allocation10]  }
  0x1c   : > { %s2811_s29 = scalar_select %p2310_p4, 1, 0 }
  0x1d   : > { %s2812_s30 = scalar_select %p2315_p6, 1, 0 }
  0x1e   : > { %p2320_p8 = pnand %p1566_p5, %p358_p7  ;;  %s370_s15 = sshll.u32 %s2186_s14, 4  ;;  %s371_s15 = int_to_ptr.vmem [resolvable:$true] %s370_s15 }
  0x1f   : > { %2813 = sst [smem:[#allocation28_spill]] %s2812_s30  ;;  %s49_s17 = sadd.s32 1, %s2180_s25 }
  0x20   : > { %s2814_s13 = scalar_select %p2320_p8, 1, 0 }
  0x21   : > { %p1757_p9 = pneg %p2320_p8  ;;  %s2816_s3 = sld [smem:[#allocation33_spill]] }
  0x23   : > { %p2329_p11 = pnand %p1757_p9, %p2775_p1 }
  0x25   : > { %s2815_s16 = scalar_select %p2329_p11, 1, 0 }
  0x26   : > { %p2342_p13 = pneg %p2329_p11 }
  0x27   : > { %s1884_s20 = scalar_lea.hbm %s2816_s3, 256 }
  0x28   : > { %p1885_p12 = scmp.ne.s32.totalorder %s2816_s3, %s1884_s20  ;;  %p1891_p5 = scmp.lt.u32.totalorder %s1884_s20, %s2816_s3 }
  0x29   : > { %s2817_s14 = scalar_select %p2342_p13, 1, 0 }
  0x2a   : > { %p1887_p0 = pnand %p2342_p13, %p1885_p12 }
  0x2c   : > { %p1888_p3 = pneg %p1887_p0 }
  0x2e   : > { %p1893_p7 = pnand %p1891_p5, %p1888_p3 }
  0x30   : > { %1896 = shalt.err (!%p1893_p7)
}
  0x31   : > { %s1897_s18 = scalar_lea.vmem %s371_s15, 256  ;;  %p1905_p2 = scmp.lt.s32.totalorder %s371_s15, %s371_s15 }
  0x32   : > { %p1898_p9 = scmp.ne.s32.totalorder %s371_s15, %s1897_s18  ;;  %p1906_p6 = scmp.lt.s32.totalorder %s1897_s18, %s1897_s18 }
  0x34   : > { %p1900_p10 = pnand %p1898_p9, %p2342_p13  ;;  %p1907_p4 = por %p1906_p6, %p1905_p2 }
  0x36   : > { %p1901_p1 = pneg %p1900_p10 }
  0x38   : > { %p1908_p8 = pnand %p1907_p4, %p1901_p1 }
  0x3a   : > { %1911 = shalt.err (!%p1908_p8)
}
  0x3b   : > { %s2778_s30 = smov 64   ;;  %s2779_s11 = smov 4  }
  0x3c   : > { %1760 = dma.hbm_to_vmem [thread:$0]  (!%p2329_p11), %s2816_s3, 256, %s371_s15, [#allocation11], %s2778_s30, %s2778_s30, %s2779_s11  }
  0x3d   : > { %p51_p1 = scmp.ge.s32.totalorder %s49_s17, 2  ;;  %s58_s20 = sadd.s32 1, %s2172_s23 }
  0x3e   : > { %p65_p2 = scmp.ne.s32.totalorder %s2172_s23, %s2168_s22  ;;  %p66_p4 = scmp.eq.s32.totalorder %s2184_s26, 0 }
  0x3f   : > { %s2862_s17 = smov (%p51_p1, %s49_s17), 0  ;;  %p2819_p8 = scmp.eq.s32.totalorder %s2301_s27, 1 }
  0x40   : > { %2818 = sst [smem:[#allocation29_spill]] %s2862_s17  ;;  %p67_p6 = por %p66_p4, %p65_p2 }
  0x41   : > { %p2369_p10 = por %p2819_p8, %p65_p2  ;;  %s53_s18 = ssub.s32 %s2180_s25, %s2862_s17 }
  0x42   : > { %p1787_p12 = scmp.lt.s32.totalorder %s2184_s26, 2  ;;  %p56_p0 = scmp.eq.s32.totalorder %s53_s18, 0 }
  0x43   : > { %s2820_s28 = scalar_select %p2369_p10, 1, 0 }
  0x44   : > { %s2781_s10 = sand.u32 1, %s2172_s23   ;;  %s2382_s21 = sshll.u32 %s2180_s25, 6 }
  0x45   : > { %2821 = sst [smem:[#allocation30_spill]] %s2820_s28  ;;  %s2379_s15 = sshll.u32 %s2781_s10, 2 }
  0x46   : > { %s2385_s19 = scalar_select %p56_p0, %s2172_s23, %s58_s20  }
  0x47   : > { %p2387_p3 = pnand %p1787_p12, %p67_p6  ;;  %s442_s11 = sand.u32 1, %s2184_s26  }
  0x48   : > { %2822 = sst [smem:[#allocation31_spill]] %s2385_s19  ;;  %s2824_s1 = sld [smem:[#allocation32_spill]] }
  0x49   : > { %s2823_s30 = scalar_select %p2387_p3, 1, 0 }
  0x4a   : > { %s446_s10 = scalar_lea.vmem [#allocation7], %s2379_s15  ;;  %s2189_s20 = smov [#allocation12]  }
  0x4b   : > { %s453_s25 = sshll.u32 %s446_s10, 4  ;;  %s2401_s19 = sshll.u32 %s2189_s20, 4  ;;  %s2399_s25 = int_to_ptr.vmem [resolvable:$true] %s453_s25  ;;  %s393_s19 = int_to_ptr.vmem [resolvable:$true] %s2401_s19 }
  0x4c   : > { %s2403_s12 = scalar_lea.sflag [#allocation8], %s442_s11  ;;  %p2409_p7 = pneg %p2387_p3 }
  0x4e   : > { %s2396_s18 = scalar_lea.hbm %s2824_s1, %s2382_s21  ;;  %s1917_s26 = scalar_lea.hbm %s2824_s1, 128 }
  0x4f   : > { %s1912_s28 = scalar_lea.hbm %s2396_s18, 64  ;;  %p1918_p2 = scmp.lt.u32.totalorder %s2396_s18, %s2824_s1 }
  0x50   : > { %p1913_p5 = scmp.ne.s32.totalorder %s2396_s18, %s1912_s28  ;;  %p1919_p4 = scmp.lt.u32.totalorder %s1917_s26, %s1912_s28 }
  0x51   : > { %s2825_s3 = scalar_select %p2409_p7, 1, 0 }
  0x52   : > { %p1915_p9 = pnand %p2409_p7, %p1913_p5  ;;  %p1920_p6 = por %p1919_p4, %p1918_p2 }
  0x53   : > { %p1921_p8 = scmp.lt.u32.totalorder %s1912_s28, %s2396_s18 }
  0x54   : > { %p1916_p1 = pneg %p1915_p9 }
  0x55   : > { %p1922_p12 = por %p1921_p8, %p1920_p6 }
  0x57   : > { %p1923_p0 = pnand %p1922_p12, %p1916_p1 }
  0x59   : > { %1926 = shalt.err (!%p1923_p0)
}
  0x5a   : > { %s1927_s11 = scalar_lea.vmem %s2399_s25, 64  ;;  %s2190_s17 = smov [#allocation7]  }
  0x5b   : > { %p1928_p5 = scmp.ne.s32.totalorder %s2399_s25, %s1927_s11  ;;  %s1932_s10 = sshll.u32 %s2190_s17, 4  ;;  %s1933_s10 = int_to_ptr.vmem [resolvable:$false] %s1932_s10 }
  0x5c   : > { %s1934_s24 = scalar_lea.vmem %s1933_s10, 128  ;;  %p1935_p11 = scmp.lt.s32.totalorder %s2399_s25, %s1933_s10 }
  0x5d   : > { %p1930_p9 = pnand %p1928_p5, %p2409_p7  ;;  %p1936_p13 = scmp.lt.s32.totalorder %s1934_s24, %s1927_s11 }
  0x5f   : > { %p1931_p10 = pneg %p1930_p9  ;;  %p1937_p2 = por %p1936_p13, %p1935_p11 }
  0x61   : > { %p1938_p4 = pnand %p1937_p2, %p1931_p10 }
  0x63   : > { %1941 = shalt.err (!%p1938_p4)
}
  0x64   : > { %1773 = dma.hbm_to_vmem [thread:$0]  (!%p2387_p3), %s2396_s18, 64, %s2399_s25, %s2403_s12  }
  0x65   : > { %s1942_s20 = scalar_lea.hbm %s2766_s7, 256  ;;  %p2826_p11 = scmp.ne.s32.totalorder %s2817_s14, 0 }
  0x66   : > { %p1943_p1 = scmp.ne.s32.totalorder %s2766_s7, %s1942_s20  ;;  %p1949_p6 = scmp.lt.u32.totalorder %s1942_s20, %s2766_s7 }
  0x68   : > { %p1945_p13 = pnand %p1943_p1, %p2826_p11 }
  0x6a   : > { %p1946_p10 = pneg %p1945_p13 }
  0x6c   : > { %p1951_p8 = pnand %p1949_p6, %p1946_p10 }
  0x6e   : > { %1954 = shalt.err (!%p1951_p8)
}
  0x6f   : > { %s1955_s24 = scalar_lea.vmem %s393_s19, 256  ;;  %p1963_p9 = scmp.lt.s32.totalorder %s393_s19, %s393_s19 }
  0x70   : > { %p1956_p12 = scmp.ne.s32.totalorder %s393_s19, %s1955_s24  ;;  %p1964_p2 = scmp.lt.s32.totalorder %s1955_s24, %s1955_s24 }
  0x72   : > { %p1958_p0 = pnand %p1956_p12, %p2826_p11  ;;  %p1965_p4 = por %p1964_p2, %p1963_p9 }
  0x74   : > { %p1959_p5 = pneg %p1958_p0 }
  0x76   : > { %p1966_p3 = pnand %p1965_p4, %p1959_p5 }
  0x78   : > { %1969 = shalt.err (!%p1966_p3)
}
  0x79   : > { %p2827_p1 = scmp.ne.s32.totalorder %s2815_s16, 0  ;;  %s2828_s1 = smov 4  }
  0x7a   : > { %s2829_s25 = smov 64   ;;  %s2191_s28 = smov [#allocation13]  }
  0x7b   : > { %1763 = dma.hbm_to_vmem [thread:$0]  (!%p2827_p1), %s2766_s7, 256, %s393_s19, [#allocation11], %s2829_s25, %s2829_s25, %s2828_s1  }
  0x7c   : > { %s406_s20 = sshll.u32 %s2191_s28, 4  ;;  %s1970_s10 = scalar_lea.hbm %s2767_s8, 16  ;;  %s407_s20 = int_to_ptr.vmem [resolvable:$true] %s406_s20 }
  0x7d   : > { %p1971_p3 = scmp.ne.s32.totalorder %s2767_s8, %s1970_s10  ;;  %p1977_p6 = scmp.lt.u32.totalorder %s1970_s10, %s2767_s8 }
  0x7f   : > { %p1973_p13 = pnand %p1971_p3, %p2826_p11 }
  0x81   : > { %p1974_p10 = pneg %p1973_p13 }
  0x83   : > { %p1979_p8 = pnand %p1977_p6, %p1974_p10 }
  0x85   : > { %1982 = shalt.err (!%p1979_p8)
}
  0x86   : > { %s1983_s19 = scalar_lea.vmem %s407_s20, 16  ;;  %s1990_s1 = scalar_lea.vmem %s407_s20, 32 }
  0x87   : > { %p1984_p12 = scmp.ne.s32.totalorder %s407_s20, %s1983_s19  ;;  %p1991_p9 = scmp.lt.s32.totalorder %s407_s20, %s407_s20 }
  0x88   : > { %p1992_p2 = scmp.lt.s32.totalorder %s1990_s1, %s1983_s19 }
  0x89   : > { %p1986_p0 = pnand %p1984_p12, %p2826_p11 }
  0x8a   : > { %p1993_p4 = por %p1992_p2, %p1991_p9 }
  0x8b   : > { %p1987_p5 = pneg %p1986_p0 }
  0x8d   : > { %p1994_p7 = pnand %p1993_p4, %p1987_p5 }
  0x8f   : > { %1997 = shalt.err (!%p1994_p7)
}
  0x90   : > { %1766 = dma.hbm_to_vmem [thread:$0]  (!%p2827_p1), %s2767_s8, 16, %s407_s20, [#allocation14]  }
  0x91   : > { %s2477_s14 = scalar_lea.hbm %s2759_s0, %s2382_s21  ;;  %s427_s18 = scalar_lea.vmem [#allocation4], %s2379_s15 }
  0x92   : > { %s435_s26 = sshll.u32 %s427_s18, 4  ;;  %s2830_s16 = sand.u32 1, %s2172_s23   ;;  %s436_s26 = int_to_ptr.vmem [resolvable:$true] %s435_s26 }
  0x93   : > { %s424_s28 = scalar_lea.sflag [#allocation5], %s2830_s16  ;;  %s1998_s17 = scalar_lea.hbm %s2477_s14, 64 }
  0x94   : > { %p1999_p7 = scmp.ne.s32.totalorder %s2477_s14, %s1998_s17  ;;  %p2831_p11 = scmp.ne.s32.totalorder %s2825_s3, 0 }
  0x95   : > { %s2003_s10 = scalar_lea.hbm %s2759_s0, 128  ;;  %p2004_p1 = scmp.lt.u32.totalorder %s2477_s14, %s2759_s0 }
  0x96   : > { %p2001_p3 = pnand %p1999_p7, %p2831_p11  ;;  %p2005_p10 = scmp.lt.u32.totalorder %s2003_s10, %s1998_s17 }
  0x97   : > { %p2007_p8 = scmp.lt.u32.totalorder %s1998_s17, %s2477_s14 }
  0x98   : > { %p2002_p13 = pneg %p2001_p3  ;;  %p2006_p6 = por %p2005_p10, %p2004_p1 }
  0x9a   : > { %p2008_p12 = por %p2007_p8, %p2006_p6 }
  0x9c   : > { %p2009_p0 = pnand %p2008_p12, %p2002_p13 }
  0x9e   : > { %2012 = shalt.err (!%p2009_p0)
}
  0x9f   : > { %s2013_s1 = scalar_lea.vmem %s436_s26, 64  ;;  %s2192_s9 = smov [#allocation4]  }
  0xa0   : > { %p2014_p5 = scmp.ne.s32.totalorder %s436_s26, %s2013_s1  ;;  %s2018_s25 = sshll.u32 %s2192_s9, 4  ;;  %s2019_s25 = int_to_ptr.vmem [resolvable:$false] %s2018_s25 }
  0xa1   : > { %s2020_s4 = scalar_lea.vmem %s2019_s25, 128  ;;  %p2021_p4 = scmp.lt.s32.totalorder %s436_s26, %s2019_s25 }
  0xa2   : > { %p2016_p9 = pnand %p2014_p5, %p2831_p11  ;;  %p2022_p7 = scmp.lt.s32.totalorder %s2020_s4, %s2013_s1 }
  0xa4   : > { %p2017_p2 = pneg %p2016_p9  ;;  %p2023_p3 = por %p2022_p7, %p2021_p4 }
  0xa6   : > { %p2024_p1 = pnand %p2023_p3, %p2017_p2 }
  0xa8   : > { %2027 = shalt.err (!%p2024_p1)
}
  0xa9   : > { %p2832_p10 = scmp.ne.s32.totalorder %s2823_s30, 0  ;;  %s2503_s16 = scalar_lea.hbm %s2761_s2, %s2382_s21 }
  0xaa   : > { %s464_s17 = scalar_lea.vmem [#allocation9], %s2379_s15  ;;  %s2028_s11 = scalar_lea.hbm %s2503_s16, 64 }
  0xab   : > { %1770 = dma.hbm_to_vmem [thread:$0]  (!%p2832_p10), %s2477_s14, 64, %s436_s26, %s424_s28  }
  0xac   : > { %s471_s20 = sshll.u32 %s464_s17, 4  ;;  %p2029_p13 = scmp.ne.s32.totalorder %s2503_s16, %s2028_s11  ;;  %s472_s20 = int_to_ptr.vmem [resolvable:$true] %s471_s20 }
  0xad   : > { %s2033_s14 = scalar_lea.hbm %s2761_s2, 128  ;;  %p2034_p12 = scmp.lt.u32.totalorder %s2503_s16, %s2761_s2 }
  0xae   : > { %p2031_p6 = pnand %p2029_p13, %p2831_p11  ;;  %p2035_p0 = scmp.lt.u32.totalorder %s2033_s14, %s2028_s11 }
  0xaf   : > { %p2037_p9 = scmp.lt.u32.totalorder %s2028_s11, %s2503_s16 }
  0xb0   : > { %p2032_p8 = pneg %p2031_p6  ;;  %p2036_p5 = por %p2035_p0, %p2034_p12 }
  0xb2   : > { %p2038_p2 = por %p2037_p9, %p2036_p5 }
  0xb4   : > { %p2039_p4 = pnand %p2038_p2, %p2032_p8 }
  0xb6   : > { %2042 = shalt.err (!%p2039_p4)
}
  0xb7   : > { %s2043_s15 = scalar_lea.vmem %s472_s20, 64  ;;  %s2193_s21 = smov [#allocation9]  }
  0xb8   : > { %p2044_p7 = scmp.ne.s32.totalorder %s472_s20, %s2043_s15  ;;  %s2048_s19 = sshll.u32 %s2193_s21, 4  ;;  %s2049_s19 = int_to_ptr.vmem [resolvable:$false] %s2048_s19 }
  0xb9   : > { %s2050_s1 = scalar_lea.vmem %s2049_s19, 128  ;;  %p2051_p13 = scmp.lt.s32.totalorder %s472_s20, %s2049_s19 }
  0xba   : > { %p2046_p3 = pnand %p2044_p7, %p2831_p11  ;;  %p2052_p6 = scmp.lt.s32.totalorder %s2050_s1, %s2043_s15 }
  0xbc   : > { %p2047_p1 = pneg %p2046_p3  ;;  %p2053_p10 = por %p2052_p6, %p2051_p13 }
  0xbe   : > { %p2054_p0 = pnand %p2053_p10, %p2047_p1 }
  0xc0   : > { %2057 = shalt.err (!%p2054_p0)
}
  0xc1   : > { %p2833_p12 = scmp.ne.s32.totalorder %s2823_s30, 0  ;;  %p2834_p8 = scmp.ne.s32.totalorder %s2814_s13, 0 }
  0xc2   : > { %s2527_s3 = sand.u32 (!%p2834_p8), 1, %s2168_s22   ;;  %p2835_p11 = scmp.ne.s32.totalorder (!%p2834_p8), %s2811_s29, 0 }
  0xc3   : > { %1776 = dma.hbm_to_vmem [thread:$0]  (!%p2833_p12), %s2503_s16, 64, %s472_s20, %s2403_s12  }
  0xc4   : > { %480 = sbr.rel (%p2834_p8) target bundleno = 1676 (0x68c), region = 64  ;;  %s2530_s9 = sshll.u32 (!%p2834_p8), %s2527_s3, 2 }
  0xc5   : > { %s483_s25 = scalar_lea.sflag (!%p2834_p8), [#allocation5], %s2527_s3  ;;  %s486_s4 = scalar_lea.vmem (!%p2834_p8), [#allocation4], %s2530_s9 }
  0xcb   : > { %2139 = dma.done.wait (%p2835_p11), %s483_s25, 64  }
  0xcc   : > { %2141 = vsyncadd (%p2835_p11), %s483_s25, 4294967232  ;;  %s491_s12 = sand.u32 1, %s2301_s27   ;;  %s495_s30 = scalar_lea.vmem [#allocation7], %s2530_s9 }
  0xcd   : > { %s492_s13 = scalar_lea.sflag [#allocation8], %s491_s12 }
  0xce   : > { %2143 = dma.done.wait (%p2835_p11), %s492_s13, 128  }
  0xcf   : > { %2145 = vsyncadd (%p2835_p11), %s492_s13, 4294967168  ;;  %s504_s6 = scalar_lea.vmem [#allocation9], %s2530_s9  ;;  %p2836_p10 = scmp.eq.s32.totalorder %s2301_s27, 0 }
  0xd1   : > { %2147 = dma.done.wait (%p2836_p10), [#allocation11], 512   ;;  %p2837_p5 = pmov %p2836_p10 }
  0xd3   : > { %2149 = vsyncadd (%p2837_p5), [#allocation11], 4294966784  ;;  %p2838_p9 = pmov %p2837_p5 }
  0xd4   : > { %p2839_p2 = pmov %p2837_p5 }
  0xd5   : > { %2151 = dma.done.wait (%p2838_p9), [#allocation14], 16  }
  0xd6   : > { %2153 = vsyncadd (%p2839_p2), [#allocation14], 4294967280  ;;  %v2194_v0 = vmov 0.0   ;;  %vm2195_vm0 = vmmov 0   ;;  %v1854_v1 = vld [vmem:[%s2764_s5] sm:$0xff]   ;;  %v1855_v2 = vld [vmem:[%s2764_s5 + $0x8] sm:$0xff]  }
  0xd7   : > { %1655 = vmatprep.subr.bf16.mxu0 %v2194_v0  ;;  %1659 = vmatprep.mubr.msk.bf16.mxu0 %vm2195_vm0, %v2194_v0  ;;  %v577_v3 = vld [vmem:[%s495_s30] sm:$0xf]  ;;  %vm601_vm1 = vcmask 261120   ;;  %v1856_v4 = vld [vmem:[#allocation10] sm:$0xff]   ;;  %v1857_v5 = vld [vmem:[#allocation10 + $0x8] sm:$0xff]   ;;  %s2840_s11 = sld [smem:[#allocation35_spill]] }
  0xd8   : > { %1663 = vmatprep.subr.bf16.mxu1 %v2194_v0  ;;  %1667 = vmatprep.mubr.msk.bf16.mxu1 %vm2195_vm0, %v2194_v0  ;;  %v717_v6 = vld [vmem:[%s486_s4] sm:$0xf]  ;;  %v1858_v7 = vld [vmem:[#allocation12] sm:$0xff]   ;;  %v1859_v8 = vld [vmem:[#allocation12 + $0x8] sm:$0xff]   ;;  %vm646_vm2 = vcmask 257024   ;;  %s2841_s14 = sld [smem:[#allocation34_spill]] }
  0xd9   : > { %1656 = vmatpush3.bf16.msra.mxu0 %v1854_v1  ;;  %1664 = vmatpush3.bf16.msra.mxu1 %v1858_v7  ;;  %v648_v9 = vld [vmem:[%s504_s6] sm:$0xf]  ;;  %vm788_vm3 = vcmask 64512   ;;  %s2196_s26 = smov 112   ;;  %s2197_s28 = smov 120   ;;  %vm851_vm4 = vcmask 1043456  }
  0xda   : > { %1657 = vmatprep.subr.bf16.mxu0 %v2194_v0  ;;  %1665 = vmatprep.subr.bf16.mxu1 %v2194_v0  ;;  %s2198_s15 = smov 104   ;;  %v1590_v29 = vld [vmem:[#allocation13] ss:$0 sm:$0xff]  ;;  %s1585_s21 = sshll.u32 %s2527_s3, 5  ;;  %vm1269_vm5 = vcmask 130048   ;;  %vm1271_vm6 = vcmask 195584  }
  0xdb   : > { %s2631_s19 = scalar_lea.vmem [#allocation16], %s1585_s21  ;;  %s2842_s25 = sld [smem:[#allocation36_spill]] }
  0xdc   : > { %s2199_s12 = smov 8   ;;  %s2200_s6 = smov 16  }
  0xdd   : > { %1658 = vmatpush3.bf16.msra.mxu0 %v1855_v2  ;;  %1666 = vmatpush3.bf16.msra.mxu1 %v1859_v8  ;;  %v1586_v10 = vld [vmem:[%s2840_s11] ss:$0 sm:$0xff]  ;;  %s2844_s29 = sld [smem:[#allocation25_spill]]  ;;  %s2201_s18 = smov 24  }
  0xde   : > { %1671 = vmatprep.subr.bf16.mxu0 %v2194_v0  ;;  %1679 = vmatprep.subr.bf16.mxu1 %v2194_v0  ;;  %v1594_v17 = vld [vmem:[%s2841_s14] ss:$0 sm:$0xff]  ;;  %s2845_s27 = sld [smem:[#allocation30_spill]]  ;;  %s1375_s17 = sshll.u32 %s2631_s19, 4  ;;  %s2674_s17 = int_to_ptr.vmem [resolvable:$true] %s1375_s17 }
  0xdf   : > { %s2846_s10 = sld [smem:[#allocation39_spill]]  ;;  %s1347_s14 = scalar_lea.sflag [#allocation17], %s2527_s3 }
  0xe0   : > { %1660 = vmatmul.mubr.msk.bf16.vlgmr.msra.gmra.mrb[0].mxu0 %vm601_vm1, %v577_v3  ;;  %1668 = vmatmul.mubr.msk.bf16.vlgmr.msra.gmra.mrb[0].mxu1 %vm601_vm1, %v648_v9 }
  0xe1   : > { %1672 = vmatpush3.bf16.msra.mxu0 %v1856_v4  ;;  %1675 = vmatprep.mubr.msk.bf16.mxu0 %vm2195_vm0, %v2194_v0  ;;  %s2843_s4 = smov %s2842_s25 }
  0xe2   : > { %1673 = vmatprep.subr.bf16.mxu0 %v2194_v0  ;;  %1681 = vmatprep.mubr.msk.bf16.mxu1 %vm2195_vm0, %v2194_v0 }
  0xe3   : > { %s1626_s16 = sshll.u32 %s2844_s29, 9 }
  0xe4   : > { %p2847_p7 = scmp.ne.s32.totalorder %s2845_s27, 0 }
  0xe5   : > { %1674 = vmatpush3.bf16.msra.mxu0 %v1857_v5  ;;  %s2672_s24 = scalar_lea.hbm %s2846_s10, %s1626_s16 }
  0xe6   : > { %1685 = vmatprep.subr.bf16.mxu0 %v2194_v0 }
  0xe8   : > { %1676 = vmatmul.mubr.msk.bf16.vlgmr.msra.gmra.mrb[4].mxu0 %vm601_vm1, %v717_v6 }
  0xe9   : > { %1687 = vmatprep.mubr.msk.bf16.mxu0 %vm2195_vm0, %v2194_v0 }
 0x1b3   : > { %v639_v11 = vpop.f32.mrb[0].mxu0  ;;  %v709_v30 = vpop.f32.mrb[0].mxu1 }
 0x1b4   : > { %v640_v12 = vadd.f32 %v1586_v10, %v639_v11  ;;  %v1661_v13 = vpop.f32.mrb[1].mxu0  ;;  %v710_v31 = vadd.f32 %v1590_v29, %v709_v30  ;;  %v1669_v32 = vpop.f32.mrb[1].mxu1 }
 0x1b5   : > { %v642_v14 = vpop.f32.mrb[2].mxu0  ;;  %v712_v33 = vpop.f32.mrb[2].mxu1 }
 0x1b6   : > { %v645_v15 = vpack.c.bf16 %v640_v12, %v640_v12  ;;  %v1662_v16 = vpop.f32.mrb[3].mxu0  ;;  %v715_v34 = vpack.c.bf16 %v710_v31, %v710_v31  ;;  %v1670_v35 = vpop.f32.mrb[3].mxu1 }
 0x1b8   : > { %647 = vst.msk [vmem:[#allocation2] sm:$0xf] %vm646_vm2, %v645_v15  ;;  %716 = vst.msk [vmem:[#allocation3] sm:$0xf] %vm646_vm2, %v715_v34 }
 0x1bb   : > { %v779_v18 = vpop.f32.mrb[4].mxu0 }
 0x1bc   : > { %v1677_v19 = vpop.f32.mrb[5].mxu0  ;;  %v780_v20 = vadd.f32 %v1594_v17, %v779_v18 }
 0x1bd   : > { %v782_v21 = vpop.f32.mrb[6].mxu0 }
 0x1be   : > { %v1678_v22 = vpop.f32.mrb[7].mxu0  ;;  %v785_v27 = vpack.c.bf16 %v780_v20, %v780_v20 }
 0x1bf   : > { %v786_v23 = vld [vmem:[#allocation2] sm:$0xf]  ;;  %v787_v36 = vld [vmem:[#allocation3] sm:$0xf] }
 0x1c0   : > { %v1860_v24 = vld [vmem:[#allocation2] ss:$0 sps:$4 sm:$0xff]   ;;  %v793_v25 = vsel %vm788_vm3, %v786_v23, 0  ;;  %v853_v37 = vsel %vm851_vm4, %v787_v36, 0  ;;  %v1863_v9 = vld [vmem:[#allocation3] ss:$0 sps:$4 sm:$0xff]  }
 0x1c1   : > { %v1861_v26 = vld [vmem:[#allocation2] ss:$0 sps:$4 sm:$0xff]   ;;  %1680 = vmatpush3.bf16.xpose.msra.mxu1 %v793_v25  ;;  %1023 = vrot.lane.b32.xlu1 %v1860_v24, %s2196_s26  ;;  %v1864_v25 = vld [vmem:[#allocation3] ss:$0 sps:$4 sm:$0xff]  }
 0x1c2   : > { %903 = vrot.lane.b32.xlu0 %v1861_v26, %s2197_s28  ;;  %1691 = vmatprep.subr.bf16.mxu1 %v2194_v0  ;;  %v1862_v28 = vld [vmem:[#allocation2] ss:$0 sps:$4 sm:$0xff]   ;;  %v1865_v29 = vld [vmem:[#allocation3] ss:$0 sps:$4 sm:$0xff]  }
 0x1c3   : > { %1686 = vmatpush3.bf16.msra.mxu0 %v853_v37 }
 0x1c4   : > { %1697 = vmatprep.subr.bf16.mxu0 %v2194_v0 }
 0x1c5   : > { %1018 = vrot.lane.b32.xlu1 %v785_v27, %s2196_s26 }
 0x1c6   : > { %898 = vrot.lane.b32.xlu0 %v785_v27, %s2197_s28 }
 0x1c8   : > { %1682 = vmatmul.mubr.msk.bf16.vlgmr.msra.gmra.mrb[4].mxu1 %vm788_vm3, %v785_v27 }
 0x1c9   : > { %1138 = vrot.lane.b32.xlu1 %v785_v27, %s2198_s15  ;;  %1693 = vmatprep.mubr.msk.bf16.mxu1 %vm2195_vm0, %v2194_v0 }
 0x1ca   : > { %1143 = vrot.lane.b32.xlu0 %v1862_v28, %s2198_s15 }
 0x233   : > { %v1024_v40 = vpop.permute.xlu1 %1023 }
 0x234   : > { %v904_v38 = vpop.permute.xlu0 %903  ;;  %v1029_v42 = vsel %vm788_vm3, %v1024_v40, 0 }
 0x235   : > { %v909_v39 = vsel %vm788_vm3, %v904_v38, 0 }
 0x236   : > { %1692 = vmatpush3.bf16.xpose.msra.mxu1 %v909_v39 }
 0x237   : > { %1703 = vmatprep.subr.bf16.mxu1 %v2194_v0  ;;  %v1019_v44 = vpop.permute.xlu1 %1018 }
 0x238   : > { %v899_v41 = vpop.permute.xlu0 %898 }
 0x23b   : > { %v1139_v46 = vpop.permute.xlu1 %1138 }
 0x23c   : > { %v1144_v43 = vpop.permute.xlu0 %1143 }
 0x23d   : > { %1694 = vmatmul.mubr.msk.bf16.vlgmr.msra.gmra.mrb[8].mxu1 %vm788_vm3, %v899_v41  ;;  %v1149_v45 = vsel %vm788_vm3, %v1144_v43, 0 }
 0x23e   : > { %1704 = vmatpush3.bf16.xpose.msra.mxu1 %v1029_v42  ;;  %1705 = vmatprep.mubr.msk.bf16.mxu1 %vm2195_vm0, %v2194_v0 }
 0x23f   : > { %1715 = vmatprep.subr.bf16.mxu1 %v2194_v0 }
 0x245   : > { %1706 = vmatmul.mubr.msk.bf16.vlgmr.msra.gmra.mrb[12].mxu1 %vm788_vm3, %v1019_v44 }
 0x246   : > { %1716 = vmatpush3.bf16.xpose.msra.mxu1 %v1149_v45  ;;  %1717 = vmatprep.mubr.msk.bf16.mxu1 %vm2195_vm0, %v2194_v0 }
 0x247   : > { %1727 = vmatprep.subr.bf16.mxu1 %v2194_v0 }
 0x24d   : > { %1718 = vmatmul.mubr.msk.bf16.vlgmr.msra.gmra.mrb[16].mxu1 %vm788_vm3, %v1139_v46 }
 0x24e   : > { %1731 = vmatprep.mubr.msk.bf16.mxu1 %vm2195_vm0, %v2194_v0 }
 0x29b   : > { %v829_v47 = vpop.f32.mrb[4].mxu1 }
 0x29c   : > { %v1683_v48 = vpop.f32.mrb[5].mxu1  ;;  %v835_v49 = vsel %vm788_vm3, %v829_v47, -inf }
 0x29d   : > { %836 = vmax.xlane.f32.xlu0 %v835_v49  ;;  %v832_v50 = vpop.f32.mrb[6].mxu1 }
 0x29e   : > { %v1684_v51 = vpop.f32.mrb[7].mxu1 }
 0x310   : > { %v945_v52 = vpop.f32.mrb[8].mxu1 }
 0x311   : > { %v1695_v53 = vpop.f32.mrb[9].mxu1  ;;  %v951_v54 = vsel %vm788_vm3, %v945_v52, -inf }
 0x312   : > { %952 = vmax.xlane.f32.xlu1 %v951_v54  ;;  %v948_v55 = vpop.f32.mrb[10].mxu1  ;;  %v1866_v53 = vld [vmem:[%s2842_s25] sm:$0xff]  }
 0x313   : > { %v1696_v56 = vpop.f32.mrb[11].mxu1  ;;  %1728 = vmatpush3.bf16.msra.mxu1 %v1866_v53 }
 0x314   : > { %1729 = vmatprep.subr.bf16.mxu1 %v2194_v0 }
 0x318   : > { %v1065_v57 = vpop.f32.mrb[12].mxu1 }
 0x319   : > { %v1707_v58 = vpop.f32.mrb[13].mxu1  ;;  %v1071_v59 = vsel %vm788_vm3, %v1065_v57, -inf }
 0x31a   : > { %1072 = vmax.xlane.f32.xlu0 %v1071_v59  ;;  %v1068_v60 = vpop.f32.mrb[14].mxu1  ;;  %v1867_v58 = vld [vmem:[%s2843_s4 + $0x8] sm:$0xff]  }
 0x31b   : > { %v1708_v61 = vpop.f32.mrb[15].mxu1  ;;  %1730 = vmatpush3.bf16.msra.mxu1 %v1867_v58 }
 0x320   : > { %v1185_v62 = vpop.f32.mrb[16].mxu1 }
 0x321   : > { %v1719_v63 = vpop.f32.mrb[17].mxu1  ;;  %v1191_v1 = vsel %vm788_vm3, %v1185_v62, -inf }
 0x322   : > { %1192 = vmax.xlane.f32.xlu0 %v1191_v1  ;;  %v1188_v2 = vpop.f32.mrb[18].mxu1 }
 0x323   : > { %v1720_v3 = vpop.f32.mrb[19].mxu1 }
 0x32a   : > { %v837_v4 = vpop.xlane.xlu0 %836 }
 0x32b   : > { %v838_v5 = vsub.f32 %v829_v47, %v837_v4 }
 0x32d   : > { %v839_v6 = vmul.f32 1.442695, %v838_v5 }
 0x32f   : > { %1868 = vpow2.f32 %v839_v6 }
 0x339   : > { %v1869_v7 = vpop.eup %1868 }
 0x33a   : > { %v841_v8 = vsel %vm788_vm3, %v1869_v7, 0.0 }
 0x33b   : > { %842 = vadd.xlane.f32.xlu1 %v841_v8 }
 0x34c   : > { %968 = vrot.lane.b32.xlu1 %v1863_v9, %s2197_s28  ;;  %s2202_s28 = smov [#allocation16]  }
 0x39f   : > { %v953_v10 = vpop.xlane.xlu1 %952 }
 0x3a0   : > { %v954_v11 = vsub.f32 %v945_v52, %v953_v10 }
 0x3a2   : > { %v955_v12 = vmul.f32 1.442695, %v954_v11 }
 0x3a4   : > { %1870 = vpow2.f32 %v955_v12 }
 0x3a7   : > { %v1073_v13 = vpop.xlane.xlu0 %1072 }
 0x3a8   : > { %v1074_v14 = vsub.f32 %v1065_v57, %v1073_v13 }
 0x3aa   : > { %v1075_v15 = vmul.f32 1.442695, %v1074_v14 }
 0x3ac   : > { %1872 = vpow2.f32 %v1075_v15 }
 0x3ae   : > { %v1871_v16 = vpop.eup %1870 }
 0x3af   : > { %v1193_v17 = vpop.xlane.xlu0 %1192  ;;  %v957_v18 = vsel %vm788_vm3, %v1871_v16, 0.0 }
 0x3b0   : > { %v1194_v19 = vsub.f32 %v1185_v62, %v1193_v17  ;;  %958 = vadd.xlane.f32.xlu0 %v957_v18 }
 0x3b2   : > { %v1195_v20 = vmul.f32 1.442695, %v1194_v19 }
 0x3b4   : > { %1874 = vpow2.f32 %v1195_v20 }
 0x3b6   : > { %v1873_v21 = vpop.eup %1872 }
 0x3b7   : > { %v1077_v22 = vsel %vm788_vm3, %v1873_v21, 0.0 }
 0x3b8   : > { %1078 = vadd.xlane.f32.xlu1 %v1077_v22 }
 0x3be   : > { %v1875_v23 = vpop.eup %1874 }
 0x3bf   : > { %v1197_v24 = vsel %vm788_vm3, %v1875_v23, 0.0 }
 0x3c0   : > { %1198 = vadd.xlane.f32.xlu0 %v1197_v24 }
 0x3c8   : > { %v843_v26 = vpop.xlane.xlu1 %842 }
 0x3c9   : > { %1876 = vrcp.f32 %v843_v26  ;;  %1208 = vrot.lane.b32.xlu1 %v1864_v25, %s2198_s15  ;;  %s2062_s15 = sshll.u32 %s2202_s28, 4  ;;  %s2063_s15 = int_to_ptr.vmem [resolvable:$false] %s2062_s15 }
 0x3ca   : > { %s2064_s21 = scalar_lea.vmem %s2063_s15, 1024  ;;  %p2065_p13 = scmp.lt.s32.totalorder %s2674_s17, %s2063_s15 }
 0x3cc   : > { %v969_v30 = vpop.permute.xlu1 %968 }
 0x3cd   : > { %v974_v32 = vsel %vm851_vm4, %v969_v30, 0 }
 0x3d3   : > { %v1877_v27 = vpop.eup %1876 }
 0x3d4   : > { %v845_v28 = vmul.f32 %v1877_v27, %v1869_v7 }
 0x3d6   : > { %846 = vst.msk [vmem:[%s2631_s19] sm:$0xff] %vm788_vm3, %v845_v28  ;;  %1088 = vrot.lane.b32.xlu0 %v1865_v29, %s2196_s26  ;;  %v847_v31 = vpack.c.bf16 %v845_v28, %v845_v28  ;;  %s2058_s26 = scalar_lea.vmem %s2674_s17, 512 }
 0x3d7   : > { %p2059_p4 = scmp.ne.s32.totalorder %s2674_s17, %s2058_s26  ;;  %p2066_p6 = scmp.lt.s32.totalorder %s2064_s21, %s2058_s26 }
 0x3d8   : > { %1688 = vmatmul.mubr.msk.bf16.vlgmr.msra.gmra.mrb[8].mxu0 %vm788_vm3, %v847_v31 }
 0x3d9   : > { %1698 = vmatpush3.bf16.msra.mxu0 %v974_v32  ;;  %1699 = vmatprep.mubr.msk.bf16.mxu0 %vm2195_vm0, %v2194_v0  ;;  %p2060_p3 = pnand %p2059_p4, %p2847_p7  ;;  %p2067_p0 = por %p2066_p6, %p2065_p13 }
 0x3da   : > { %1709 = vmatprep.subr.bf16.mxu0 %v2194_v0 }
 0x3db   : > { %p2061_p1 = pneg %p2060_p3 }
 0x3dd   : > { %p2068_p12 = pnand %p2067_p0, %p2061_p1 }
 0x43d   : > { %v959_v33 = vpop.xlane.xlu0 %958 }
 0x43e   : > { %1878 = vrcp.f32 %v959_v33 }
 0x445   : > { %v1079_v34 = vpop.xlane.xlu1 %1078 }
 0x446   : > { %1880 = vrcp.f32 %v1079_v34 }
 0x448   : > { %v1879_v35 = vpop.eup %1878 }
 0x449   : > { %v961_v36 = vmul.f32 %v1879_v35, %v1871_v16  ;;  %v1209_v43 = vpop.permute.xlu1 %1208 }
 0x44a   : > { %v1214_v45 = vsel %vm851_vm4, %v1209_v43, 0 }
 0x44b   : > { %1602 = vst.msk [vmem:[%s2631_s19 + $0x8] sm:$0xff] %vm788_vm3, %v961_v36  ;;  %v964_v37 = vpack.c.bf16 %v961_v36, %v961_v36 }
 0x44d   : > { %1700 = vmatmul.mubr.msk.bf16.vlgmr.msra.gmra.mrb[12].mxu0 %vm788_vm3, %v964_v37  ;;  %v1199_v38 = vpop.xlane.xlu0 %1198 }
 0x44e   : > { %1882 = vrcp.f32 %v1199_v38  ;;  %1711 = vmatprep.mubr.msk.bf16.mxu0 %vm2195_vm0, %v2194_v0 }
 0x450   : > { %v1881_v39 = vpop.eup %1880 }
 0x451   : > { %v1081_v40 = vmul.f32 %v1881_v39, %v1873_v21  ;;  %v1089_v41 = vpop.permute.xlu0 %1088 }
 0x452   : > { %v1094_v42 = vsel %vm851_vm4, %v1089_v41, 0 }
 0x453   : > { %1607 = vst.msk [vmem:[%s2631_s19 + $0x10] sm:$0xff] %vm788_vm3, %v1081_v40  ;;  %1710 = vmatpush3.bf16.msra.mxu0 %v1094_v42  ;;  %v1084_v44 = vpack.c.bf16 %v1081_v40, %v1081_v40 }
 0x454   : > { %1721 = vmatprep.subr.bf16.mxu0 %v2194_v0 }
 0x456   : > { %1712 = vmatmul.mubr.msk.bf16.vlgmr.msra.gmra.mrb[16].mxu0 %vm788_vm3, %v1084_v44 }
 0x457   : > { %1722 = vmatpush3.bf16.msra.mxu0 %v1214_v45  ;;  %1723 = vmatprep.mubr.msk.bf16.mxu0 %vm2195_vm0, %v2194_v0 }
 0x458   : > { %v1883_v46 = vpop.eup %1882 }
 0x459   : > { %v1201_v47 = vmul.f32 %v1883_v46, %v1875_v23 }
 0x45b   : > { %1612 = vst.msk [vmem:[%s2631_s19 + $0x18] sm:$0xff] %vm788_vm3, %v1201_v47  ;;  %v1204_v48 = vpack.c.bf16 %v1201_v47, %v1201_v47 }
 0x45e   : > { %1724 = vmatmul.mubr.msk.bf16.vlgmr.msra.gmra.mrb[20].mxu0 %vm788_vm3, %v1204_v48 }
 0x4ab   : > { %v889_v49 = vpop.f32.mrb[8].mxu0 }
 0x4ac   : > { %v1689_v50 = vpop.f32.mrb[9].mxu0 }
 0x4ad   : > { %v892_v51 = vpop.f32.mrb[10].mxu0 }
 0x4ae   : > { %v1690_v52 = vpop.f32.mrb[11].mxu0 }
 0x520   : > { %v1010_v54 = vpop.f32.mrb[12].mxu0 }
 0x521   : > { %1257 = vrot.lane.b32.xlu1 %v1010_v54, %s2199_s12  ;;  %v1701_v55 = vpop.f32.mrb[13].mxu0 }
 0x522   : > { %v1013_v56 = vpop.f32.mrb[14].mxu0 }
 0x523   : > { %v1702_v57 = vpop.f32.mrb[15].mxu0 }
 0x529   : > { %v1130_v59 = vpop.f32.mrb[16].mxu0 }
 0x52a   : > { %1261 = vrot.lane.b32.xlu0 %v1130_v59, %s2200_s6  ;;  %v1713_v60 = vpop.f32.mrb[17].mxu0 }
 0x52b   : > { %v1133_v61 = vpop.f32.mrb[18].mxu0 }
 0x52c   : > { %v1714_v62 = vpop.f32.mrb[19].mxu0 }
 0x531   : > { %v1250_v63 = vpop.f32.mrb[20].mxu0 }
 0x532   : > { %1265 = vrot.lane.b32.xlu1 %v1250_v63, %s2201_s18  ;;  %v1725_v0 = vpop.f32.mrb[21].mxu0 }
 0x533   : > { %v1253_v1 = vpop.f32.mrb[22].mxu0 }
 0x534   : > { %v1726_v2 = vpop.f32.mrb[23].mxu0 }
 0x593   : > { %v1258_v3 = vpop.permute.xlu1 %1257 }
 0x594   : > { %v1268_v5 = vsel %vm788_vm3, %v889_v49, %v1258_v3 }
 0x59c   : > { %v1262_v4 = vpop.permute.xlu0 %1261 }
 0x59d   : > { %v1270_v6 = vsel %vm1269_vm5, %v1268_v5, %v1262_v4 }
 0x5a4   : > { %v1266_v7 = vpop.permute.xlu1 %1265 }
 0x5a5   : > { %v1272_v8 = vsel %vm1271_vm6, %v1270_v6, %v1266_v7 }
 0x5a6   : > { %v1273_v9 = vpack.c.bf16 %v1272_v8, %v1272_v8 }
 0x5a8   : > { %1732 = vmatmul.mubr.msk.bf16.vlgmr.msra.gmra.mrb[20].mxu1 %vm601_vm1, %v1273_v9 }
 0x5a9   : > { %2071 = shalt.err (!%p2068_p12)
}
 0x5aa   : > { %s2072_s19 = scalar_lea.hbm %s2672_s24, 512  ;;  %s2076_s25 = scalar_lea.hbm %s2846_s10, 1024 }
 0x5ab   : > { %p2073_p8 = scmp.ne.s32.totalorder %s2672_s24, %s2072_s19  ;;  %p2077_p5 = scmp.lt.u32.totalorder %s2672_s24, %s2846_s10 }
 0x5ac   : > { %p2078_p9 = scmp.lt.u32.totalorder %s2076_s25, %s2072_s19  ;;  %p2080_p4 = scmp.lt.u32.totalorder %s2072_s19, %s2672_s24 }
 0x5ad   : > { %p2074_p11 = pnand %p2073_p8, %p2847_p7 }
 0x5ae   : > { %p2079_p2 = por %p2078_p9, %p2077_p5 }
 0x5af   : > { %p2075_p10 = pneg %p2074_p11 }
 0x5b0   : > { %p2081_p3 = por %p2080_p4, %p2079_p2 }
 0x5b2   : > { %p2082_p1 = pnand %p2081_p3, %p2075_p10 }
 0x5b4   : > { %2085 = shalt.err (!%p2082_p1)
}
 0x5b5   : > { %s2203_s6 = smov 128   ;;  %s1584_s18 = sshll.u32 %s2527_s3, 3 }
 0x5b6   : > { %1754 = dma.vmem_to_hbm [thread:$0]  (%p2847_p7), %s2674_s17, 512, %s2672_s24, %s1347_s14, %s2203_s6, %s2203_s6, %s2199_s12  }
 0x5b7   : > { %s2848_s11 = sld [smem:[#allocation37_spill]]  ;;  %s1621_s26 = sshll.u32 %s2844_s29, 7 }
 0x5b8   : > { %s564_s28 = scalar_lea.vmem [#allocation15], %s1584_s18  ;;  %s2849_s1 = sld [smem:[#allocation38_spill]] }
 0x5b9   : > { %s1361_s15 = sshll.u32 %s564_s28, 4  ;;  %s1342_s12 = scalar_lea.sflag [#allocation6], %s2527_s3  ;;  %s2711_s15 = int_to_ptr.vmem [resolvable:$true] %s1361_s15 }
 0x5ba   : > { %s2086_s29 = scalar_lea.vmem %s2711_s15, 128  ;;  %s2204_s17 = smov [#allocation15]  }
 0x5bb   : > { %p2087_p13 = scmp.ne.s32.totalorder %s2711_s15, %s2086_s29  ;;  %s2090_s24 = sshll.u32 %s2204_s17, 4  ;;  %s2091_s24 = int_to_ptr.vmem [resolvable:$false] %s2090_s24 }
 0x5bc   : > { %s2092_s14 = scalar_lea.vmem %s2091_s24, 256  ;;  %p2093_p12 = scmp.lt.s32.totalorder %s2711_s15, %s2091_s24 }
 0x5bd   : > { %v1615_v10 = vld [vmem:[%s2848_s11] ss:$0 sm:$0xff]  ;;  %p2088_p6 = pnand %p2087_p13, %p2847_p7  ;;  %p2094_p8 = scmp.lt.s32.totalorder %s2092_s14, %s2086_s29 }
 0x5be   : > { %s2709_s9 = scalar_lea.hbm %s2849_s1, %s1621_s26 }
 0x5bf   : > { %p2089_p0 = pneg %p2088_p6  ;;  %p2095_p11 = por %p2094_p8, %p2093_p12 }
 0x5c1   : > { %p2096_p10 = pnand %p2095_p11, %p2089_p0 }
 0x67b   : > { %v1334_v11 = vpop.f32.mrb[20].mxu1 }
 0x67c   : > { %v1335_v12 = vadd.f32 %v1615_v10, %v1334_v11  ;;  %v1733_v13 = vpop.f32.mrb[21].mxu1 }
 0x67d   : > { %v1337_v14 = vpop.f32.mrb[22].mxu1 }
 0x67e   : > { %v1734_v15 = vpop.f32.mrb[23].mxu1  ;;  %1340 = vst.msk [vmem:[%s564_s28] sm:$0xff] %vm601_vm1, %v1335_v12 }
 0x67f   : > { %2099 = shalt.err (!%p2096_p10)
}
 0x680   : > { %s2100_s3 = scalar_lea.hbm %s2709_s9, 128  ;;  %s2104_s30 = scalar_lea.hbm %s2849_s1, 256 }
 0x681   : > { %p2101_p5 = scmp.ne.s32.totalorder %s2709_s9, %s2100_s3  ;;  %p2105_p4 = scmp.lt.u32.totalorder %s2709_s9, %s2849_s1 }
 0x682   : > { %p2106_p3 = scmp.lt.u32.totalorder %s2104_s30, %s2100_s3  ;;  %p2108_p13 = scmp.lt.u32.totalorder %s2100_s3, %s2709_s9 }
 0x683   : > { %p2102_p9 = pnand %p2101_p5, %p2847_p7 }
 0x684   : > { %p2107_p1 = por %p2106_p3, %p2105_p4 }
 0x685   : > { %p2103_p2 = pneg %p2102_p9 }
 0x686   : > { %p2109_p6 = por %p2108_p13, %p2107_p1 }
 0x688   : > { %p2110_p0 = pnand %p2109_p6, %p2103_p2 }
 0x68a   : > { %2113 = shalt.err (!%p2110_p0)
}
 0x68b   : > { %1753 = dma.vmem_to_hbm [thread:$0]  (%p2847_p7), %s2711_s15, 128, %s2709_s9, %s1342_s12  }
 0x68c PF: > { %s2850_s16 = sld [smem:[#allocation24_spill]]  ;;  %s2851_s20 = sld [smem:[#allocation28_spill]] }
 0x68d   : > { %s2852_s11 = sld [smem:[#allocation27_spill]] }
 0x692   : > { %s1390_s26 = sand.u32 1, %s2850_s16   ;;  %p2853_p12 = scmp.ne.s32.totalorder %s2851_s20, 0 }
 0x693   : > { %p2854_p8 = scmp.ge.s32.totalorder %s2852_s11, 2  ;;  %s1391_s28 = scalar_lea.sflag [#allocation6], %s1390_s26 }
 0x695   : > { %p1778_p11 = pnand %p2854_p8, %p2853_p12 }
 0x697   : > { %2155 = dma.done.wait (!%p1778_p11), %s1391_s28, 128  }
 0x698   : > { %2157 = vsyncadd (!%p1778_p11), %s1391_s28, 4294967168  ;;  %s1400_s21 = scalar_lea.sflag [#allocation17], %s1390_s26 }
 0x699   : > { %2159 = dma.done.wait (!%p1778_p11), %s1400_s21, 512  }
 0x69a   : > { %2161 = vsyncadd (!%p1778_p11), %s1400_s21, 4294966784  ;;  %s37_s26 = sadd.s32 1, %s2852_s11   ;;  %s2855_s27 = sld [smem:[#allocation31_spill]] }
 0x69b   : > { %p34_p10 = scmp.ge.s32.totalorder %s37_s26, 4   ;;  %s2856_s24 = sld [smem:[#allocation26_spill]] }
 0x69c   : > { %s2857_s25 = sld [smem:[#allocation29_spill]]  ;;  %s2858_s21 = smov %s2168_s22 }
 0x69d   : > { %s2859_s22 = smov %s2172_s23  ;;  %36 = sbr.rel (!%p34_p10) target bundleno = 21 (0x15), region = 169 }
 0x6a0   : > { %s2860_s23 = smov %s2855_s27 }
 0x6a4   :  { %1405 = vsyncpa [#allocation5], 1 }
 0x6a5   :  { %1407 = vsyncpa [#allocation5 + $0x1], 1 }
 0x6a6   :  { %1408 = vsyncpa [#allocation8], 1 }
 0x6a7   :  { %1410 = vsyncpa [#allocation8 + $0x1], 1 }
 0x6a8   :  { %1411 = vsyncpa [#allocation11], 1 }
 0x6a9   :  { %1412 = vsyncpa [#allocation14], 1 }
 0x6aa   :  { %1413 = vsyncpa [#allocation6], 1 }
 0x6ab   :  { %1415 = vsyncpa [#allocation6 + $0x1], 1 }
 0x6ac   :  { %1416 = vsyncpa [#allocation17], 1 }
 0x6ad   :  { %1418 = vsyncpa [#allocation17 + $0x1], 1 }

</bundles_post_ra>
